<compile_context>
chip_gen: v5e
topology: v5e:2x2
jax: 0.10.0
libtpu: 0.0.40
codegen_flags: <defaults>
</compile_context>

<pallas_src>
import functools

import jax
import jax.numpy as jnp
import numpy as np
from jax import lax
from jax.experimental import pallas as pl
from jax.experimental.pallas import tpu as pltpu


def _cnn1x1_bn_lrelu_kernel(x_ref, w_ref, g_ref, b_ref, o_ref,
                            *, tl, inv_n, eps, neg_slope, valid_lanes):
    """Single-pass fused 1x1 conv + train-mode BatchNorm + LeakyReLU.

    x_ref : (Bb, Cin, tl)   one lane-tile of the (possibly batch-folded) input
    w_ref : (Cout, Cin)     conv weight
    g_ref : (Cout, 1)       BN gamma
    b_ref : (Cout, 1)       BN beta
    o_ref : (Bb, Cout, Lp)  FULL output, VMEM-resident across the grid; used as
                            the conv cache while streaming, normalized in place
                            on the last grid step, written back to HBM once.
    """
    t = pl.program_id(0)
    nt = pl.num_programs(0)
    Bb = x_ref.shape[0]
    lp = o_ref.shape[-1]

    # --- Streaming pass: conv tile -> resident output (acts as conv cache). --
    start = pl.multiple_of(t * tl, tl)
    w = w_ref[...]
    for b in range(Bb):                       # static, Bb in {1, B}: unrolled
        conv = jnp.dot(w, x_ref[b], preferred_element_type=jnp.float32)
        o_ref[b, :, pl.ds(start, tl)] = conv

    # --- Finalize: two-pass BN stats over the VMEM-resident conv cache. ------
    @pl.when(t == nt - 1)
    def _():
        if valid_lanes != lp:                 # static: only if lane padding
            lane_ok = lax.broadcasted_iota(jnp.int32, (1, lp), 1) < valid_lanes

        # Pass 1: per-channel mean. (Padded lanes hold exact zeros: the conv is
        # linear with no bias, so they contribute nothing to the sum.)
        sacc = None
        for b in range(Bb):
            s = jnp.sum(o_ref[b], axis=1, keepdims=True)
            sacc = s if sacc is None else sacc + s
        mean = sacc * inv_n                                       # (Cout, 1)

        # Pass 2: per-channel variance (two-pass -> no catastrophic
        # E[x^2]-E[x]^2 cancellation).  All reads hit VMEM only.
        vacc = None
        for b in range(Bb):
            d = o_ref[b] - mean
            if valid_lanes != lp:
                d = jnp.where(lane_ok, d, 0.0)
            s = jnp.sum(d * d, axis=1, keepdims=True)
            vacc = s if vacc is None else vacc + s
        var = vacc * inv_n

        # Fold BN into one per-channel scale/shift; apply + LeakyReLU in place.
        scale = g_ref[...] * lax.rsqrt(var + eps)
        shift = b_ref[...] - mean * scale
        for b in range(Bb):
            y = o_ref[b] * scale + shift
            o_ref[b] = jnp.where(y > 0, y, neg_slope * y)


def cnn_block_1x1(x_nchw, weight_oihw, gamma, beta, *, eps=1e-5, neg_slope=0.1,
                  compute_dtype=jnp.float32, lane_cap=2048):
    """CNNBlock with kernel_size=1, stride=1, padding=0. NCHW in, NCHW out.

    Note: on v6e/v7x pass compute_dtype=jnp.bfloat16 ONLY if the FPN features
    already live in HBM as bf16 (the wrapper cast on an f32 input would add a
    full extra HBM pass and cancel the saving).  f32 kept here for a tight
    numerical check; BN statistics are always f32.
    """
    B, Cin, H, W = x_nchw.shape
    Cout = weight_oihw.shape[0]
    assert weight_oihw.shape[1:] == (Cin, 1, 1), weight_oihw.shape

    HW = H * W
    n_stat = B * HW                           # BN population size (per channel)

    x = x_nchw.reshape(B, Cin, HW)            # free (contiguous) reshape
    if x.dtype != compute_dtype:
        x = x.astype(compute_dtype)

    # Fold batch into the lane axis for lane-sparse scales (e.g. the 8x8 grid):
    # dense vector stores + single grid step; the transpose of this ~128 KiB
    # tensor is negligible layout plumbing.  Larger scales keep native layout
    # (no wrapper transpose of the dominant input stream).
    fold_batch = HW < 128
    if fold_batch:
        x = jnp.transpose(x, (1, 0, 2)).reshape(1, Cin, B * HW)
        Bb, L = 1, B * HW
    else:
        Bb, L = B, HW

    # Lane tiling: one full-width tile when it fits the cap, else 128*k tiles.
    if L <= lane_cap:
        tl, lp = L, L                         # single tile, no padding
    else:
        tl = lane_cap
        lp = -(-L // tl) * tl
        if lp != L:
            # Zero lanes give zero conv columns (linear, no bias) so BN stats
            # stay exact; padded columns are sliced off below.
            x = jnp.pad(x, ((0, 0), (0, 0), (0, lp - L)))
    num_t = lp // tl

    w = weight_oihw.reshape(Cout, Cin).astype(compute_dtype)
    g2 = gamma.reshape(Cout, 1).astype(jnp.float32)
    b2 = beta.reshape(Cout, 1).astype(jnp.float32)

    kernel = functools.partial(
        _cnn1x1_bn_lrelu_kernel,
        tl=tl, inv_n=1.0 / float(n_stat), eps=float(eps),
        neg_slope=float(neg_slope), valid_lanes=L,
    )

    cost = pl.CostEstimate(
        flops=2 * Bb * lp * Cin * Cout,       # x streamed and matmul'd ONCE
        transcendentals=0,
        bytes_accessed=(x.size * x.dtype.itemsize
                        + w.size * w.dtype.itemsize
                        + g2.size * 4 + b2.size * 4
                        + Bb * Cout * lp * 4),
    )

    out = pl.pallas_call(
        kernel,
        out_shape=jax.ShapeDtypeStruct((Bb, Cout, lp), jnp.float32),
        grid_spec=pltpu.PrefetchScalarGridSpec(
            num_scalar_prefetch=0,
            grid=(num_t,),                    # spatial lane tiles only
            in_specs=[
                pl.BlockSpec((Bb, Cin, tl), lambda t: (0, 0, t)),
                pl.BlockSpec((Cout, Cin), lambda t: (0, 0)),
                pl.BlockSpec((Cout, 1), lambda t: (0, 0)),
                pl.BlockSpec((Cout, 1), lambda t: (0, 0)),
            ],
            # Constant index map -> whole output stays VMEM-resident across the
            # grid (conv cache); Pallas writes it back to HBM exactly once.
            out_specs=pl.BlockSpec((Bb, Cout, lp), lambda t: (0, 0, 0)),
        ),
        compiler_params=pltpu.CompilerParams(
            # Reduction into the shared resident output -> sequential axis.
            dimension_semantics=("arbitrary",),
            vmem_limit_bytes=32 * 1024 * 1024,
        ),
        cost_estimate=cost,
    )(x, w, g2, b2)

    if lp != L:
        out = out[:, :, :L]
    if fold_batch:
        out = out.reshape(Cout, B, HW).transpose(1, 0, 2)
    return out.reshape(B, Cout, H, W)


def detection_head(p3, p4, p5, params, *, num_classes, num_anchors,
                   eps=1e-5, neg_slope=0.1, compute_dtype=jnp.float32):
    """JAX/Pallas equivalent of DetectionHead.forward (training-mode BN)."""
    # TODO(synk): the three per-scale pallas_calls could be fused into one call
    # (stacked weights + scalar-prefetched per-scale offsets) to amortize launch
    # overhead further; kept separate here for clarity.
    box_out = 5 + num_classes
    outs = []
    for x, (w, g, b) in zip((p3, p4, p5), params):
        bsz, _, gx, gy = x.shape
        y = cnn_block_1x1(x, w, g, b, eps=eps, neg_slope=neg_slope,
                          compute_dtype=compute_dtype)
        # Identical semantics to torch `.view(b, A, gx, gy, 5 + C)` applied to
        # the contiguous NCHW conv output (row-major flatten/unflatten).
        outs.append(y.reshape(bsz, num_anchors, gx, gy, box_out))
    return tuple(outs)


# TODO(synk): BatchNorm2d running_mean/var buffer updates (a training-time side
# effect, not part of the returned tensors) are not reproduced.


def _reference_detection_head(inputs, params, *, num_classes, num_anchors,
                              eps=1e-5, neg_slope=0.1):
    """Pure-JAX reference: 1x1 conv + train-mode BN + LeakyReLU + raw view."""
    box_out = 5 + num_classes
    outs = []
    for x, (w, g, b) in zip(inputs, params):
        B, Cin, H, W = x.shape
        Cout = w.shape[0]
        conv = jnp.einsum("bchw,oc->bohw",
                          x.astype(jnp.float32),
                          w.reshape(Cout, Cin).astype(jnp.float32))
        mean = jnp.mean(conv, axis=(0, 2, 3), keepdims=True)
        var = jnp.mean((conv - mean) ** 2, axis=(0, 2, 3), keepdims=True)
        y = (conv - mean) * lax.rsqrt(var + eps)
        y = y * g.reshape(1, -1, 1, 1) + b.reshape(1, -1, 1, 1)
        y = jnp.where(y > 0, y, neg_slope * y)
        outs.append(y.reshape(B, num_anchors, H, W, box_out))
    return tuple(outs)


if __name__ == "__main__":
    # DetectionHead(num_classes=3, num_anchors=3): Cout = 3 * (5 + 3) = 24
    num_classes, num_anchors = 3, 3
    box_out = 5 + num_classes
    Cout = num_anchors * box_out
    B, Cin = 2, 256
    grids = (32, 16, 8)   # p3, p4, p5 per the module docstring

    key = jax.random.PRNGKey(0)
    keys = jax.random.split(key, 12)

    p3 = jax.random.normal(keys[0], (B, Cin, 32, 32), dtype=jnp.float32)
    p4 = jax.random.normal(keys[1], (B, Cin, 16, 16), dtype=jnp.float32)
    p5 = jax.random.normal(keys[2], (B, Cin, 8, 8), dtype=jnp.float32)

    params = []
    for i in range(3):
        w = 0.05 * jax.random.normal(keys[3 + 3 * i], (Cout, Cin, 1, 1),
                                     dtype=jnp.float32)
        g = 1.0 + 0.1 * jax.random.normal(keys[4 + 3 * i], (Cout,),
                                          dtype=jnp.float32)
        b = 0.1 * jax.random.normal(keys[5 + 3 * i], (Cout,),
                                    dtype=jnp.float32)
        params.append((w, g, b))

    outs = detection_head(p3, p4, p5, params,
                          num_classes=num_classes, num_anchors=num_anchors)
    outs = jax.block_until_ready(outs)

    refs = jax.block_until_ready(
        _reference_detection_head((p3, p4, p5), params,
                                  num_classes=num_classes,
                                  num_anchors=num_anchors))

    for o, r, G in zip(outs, refs, grids):
        assert o.shape == (B, num_anchors, G, G, box_out), o.shape
        np.testing.assert_allclose(np.asarray(o), np.asarray(r),
                                   rtol=1e-3, atol=1e-3)
    print("KERNEL_OK")
</pallas_src>

<mosaic_0001>
module attributes {stable_mosaic.version = 11 : i64} {
  func.func @_cnn1x1_bn_lrelu_kernel(%arg0: i32, %arg1: memref<2x256x1024xf32, #tpu.memory_space<vmem>>, %arg2: memref<24x256xf32, #tpu.memory_space<vmem>>, %arg3: memref<24x1xf32, #tpu.memory_space<vmem>>, %arg4: memref<24x1xf32, #tpu.memory_space<vmem>>, %arg5: memref<2x24x1024xf32, #tpu.memory_space<vmem>>) attributes {dimension_semantics = [#tpu.dimension_semantics<arbitrary>], iteration_bounds = array<i64: 1>, scalar_prefetch = 0 : i64, scratch_operands = 0 : i64, tpu.core_type = #tpu.core_type<tc>, window_params = [{transform_indices = @transform_0, window_bounds = array<i64: 2, 256, 1024>}, {pipeline_mode = #tpu.pipeline_mode<synchronous>, transform_indices = @transform_1, window_bounds = array<i64: 24, 256>}, {pipeline_mode = #tpu.pipeline_mode<synchronous>, transform_indices = @transform_2, window_bounds = array<i64: 24, 1>}, {pipeline_mode = #tpu.pipeline_mode<synchronous>, transform_indices = @transform_3, window_bounds = array<i64: 24, 1>}, {pipeline_mode = #tpu.pipeline_mode<synchronous>, transform_indices = @transform_4, window_bounds = array<i64: 2, 24, 1024>}]} {
    %c1024_i32 = arith.constant 1024 : i32
    %0 = arith.muli %arg0, %c1024_i32 : i32
    %1 = tpu.assume_multiple %0, 1024 : i32
    %c0 = arith.constant 0 : index
    %c0_0 = arith.constant 0 : index
    %2 = vector.load %arg2[%c0, %c0_0] : memref<24x256xf32, #tpu.memory_space<vmem>>, vector<24x256xf32>
    %c0_1 = arith.constant 0 : index
    %c0_2 = arith.constant 0 : index
    %c0_3 = arith.constant 0 : index
    %3 = vector.load %arg1[%c0_1, %c0_2, %c0_3] : memref<2x256x1024xf32, #tpu.memory_space<vmem>>, vector<1x256x1024xf32>
    %4 = vector.shape_cast %3 : vector<1x256x1024xf32> to vector<256x1024xf32>
    %cst = arith.constant dense<0.000000e+00> : vector<24x1024xf32>
    %5 = tpu.matmul %2, %4, %cst {dimension_numbers = #tpu.dot_dimension_numbers<[1], [0], [0], [1], [0, 0, 1, 1], [], []>} : vector<24x256xf32>, vector<256x1024xf32>, vector<24x1024xf32> -> vector<24x1024xf32>
    %c0_4 = arith.constant 0 : index
    %c0_5 = arith.constant 0 : index
    %6 = arith.index_cast %1 : i32 to index
    %7 = vector.load %arg5[%c0_4, %c0_5, %6] : memref<2x24x1024xf32, #tpu.memory_space<vmem>>, vector<1x24x1024xf32>
    %8 = vector.shape_cast %7 : vector<1x24x1024xf32> to vector<24x1024xf32>
    %9 = vector.shape_cast %5 : vector<24x1024xf32> to vector<1x24x1024xf32>
    tpu.vector_store %arg5[%c0_4, %c0_5, %6], %9 {strides = array<i32>} : memref<2x24x1024xf32, #tpu.memory_space<vmem>>, vector<1x24x1024xf32>,
    %c1 = arith.constant 1 : index
    %c0_6 = arith.constant 0 : index
    %c0_7 = arith.constant 0 : index
    %10 = vector.load %arg1[%c1, %c0_6, %c0_7] : memref<2x256x1024xf32, #tpu.memory_space<vmem>>, vector<1x256x1024xf32>
    %11 = vector.shape_cast %10 : vector<1x256x1024xf32> to vector<256x1024xf32>
    %cst_8 = arith.constant dense<0.000000e+00> : vector<24x1024xf32>
    %12 = tpu.matmul %2, %11, %cst_8 {dimension_numbers = #tpu.dot_dimension_numbers<[1], [0], [0], [1], [0, 0, 1, 1], [], []>} : vector<24x256xf32>, vector<256x1024xf32>, vector<24x1024xf32> -> vector<24x1024xf32>
    %c1_9 = arith.constant 1 : index
    %c0_10 = arith.constant 0 : index
    %13 = arith.index_cast %1 : i32 to index
    %14 = vector.load %arg5[%c1_9, %c0_10, %13] : memref<2x24x1024xf32, #tpu.memory_space<vmem>>, vector<1x24x1024xf32>
    %15 = vector.shape_cast %14 : vector<1x24x1024xf32> to vector<24x1024xf32>
    %16 = vector.shape_cast %12 : vector<24x1024xf32> to vector<1x24x1024xf32>
    tpu.vector_store %arg5[%c1_9, %c0_10, %13], %16 {strides = array<i32>} : memref<2x24x1024xf32, #tpu.memory_space<vmem>>, vector<1x24x1024xf32>,
    %c0_i32 = arith.constant 0 : i32
    %17 = arith.cmpi eq, %arg0, %c0_i32 : i32
    %18 = arith.extui %17 : i1 to i32
    %c0_i32_11 = arith.constant 0 : i32
    %19 = arith.cmpi ne, %18, %c0_i32_11 : i32
    scf.if %19 {
      %c0_12 = arith.constant 0 : index
      %c0_13 = arith.constant 0 : index
      %c0_14 = arith.constant 0 : index
      %20 = vector.load %arg5[%c0_12, %c0_13, %c0_14] : memref<2x24x1024xf32, #tpu.memory_space<vmem>>, vector<1x24x1024xf32>
      %21 = vector.shape_cast %20 : vector<1x24x1024xf32> to vector<24x1024xf32>
      %cst_15 = arith.constant dense<0.000000e+00> : vector<24xf32>
      %22 = vector.multi_reduction <add>, %21, %cst_15 [1] : vector<24x1024xf32> to vector<24xf32>
      %23 = vector.shape_cast %22 : vector<24xf32> to vector<24x1xf32>
      %c1_16 = arith.constant 1 : index
      %c0_17 = arith.constant 0 : index
      %c0_18 = arith.constant 0 : index
      %24 = vector.load %arg5[%c1_16, %c0_17, %c0_18] : memref<2x24x1024xf32, #tpu.memory_space<vmem>>, vector<1x24x1024xf32>
      %25 = vector.shape_cast %24 : vector<1x24x1024xf32> to vector<24x1024xf32>
      %cst_19 = arith.constant dense<0.000000e+00> : vector<24xf32>
      %26 = vector.multi_reduction <add>, %25, %cst_19 [1] : vector<24x1024xf32> to vector<24xf32>
      %27 = vector.shape_cast %26 : vector<24xf32> to vector<24x1xf32>
      %28 = arith.addf %23, %27 : vector<24x1xf32>
      %cst_20 = arith.constant 4.8828125E-4 : f32
      %29 = vector.broadcast %cst_20 : f32 to vector<24x1xf32>
      %30 = arith.mulf %28, %29 : vector<24x1xf32>
      %c0_21 = arith.constant 0 : index
      %c0_22 = arith.constant 0 : index
      %c0_23 = arith.constant 0 : index
      %31 = vector.load %arg5[%c0_21, %c0_22, %c0_23] : memref<2x24x1024xf32, #tpu.memory_space<vmem>>, vector<1x24x1024xf32>
      %32 = vector.shape_cast %31 : vector<1x24x1024xf32> to vector<24x1024xf32>
      %33 = vector.broadcast %30 : vector<24x1xf32> to vector<24x1024xf32>
      %34 = arith.subf %32, %33 : vector<24x1024xf32>
      %35 = arith.mulf %34, %34 : vector<24x1024xf32>
      %cst_24 = arith.constant dense<0.000000e+00> : vector<24xf32>
      %36 = vector.multi_reduction <add>, %35, %cst_24 [1] : vector<24x1024xf32> to vector<24xf32>
      %37 = vector.shape_cast %36 : vector<24xf32> to vector<24x1xf32>
      %c1_25 = arith.constant 1 : index
      %c0_26 = arith.constant 0 : index
      %c0_27 = arith.constant 0 : index
      %38 = vector.load %arg5[%c1_25, %c0_26, %c0_27] : memref<2x24x1024xf32, #tpu.memory_space<vmem>>, vector<1x24x1024xf32>
      %39 = vector.shape_cast %38 : vector<1x24x1024xf32> to vector<24x1024xf32>
      %40 = vector.broadcast %30 : vector<24x1xf32> to vector<24x1024xf32>
      %41 = arith.subf %39, %40 : vector<24x1024xf32>
      %42 = arith.mulf %41, %41 : vector<24x1024xf32>
      %cst_28 = arith.constant dense<0.000000e+00> : vector<24xf32>
      %43 = vector.multi_reduction <add>, %42, %cst_28 [1] : vector<24x1024xf32> to vector<24xf32>
      %44 = vector.shape_cast %43 : vector<24xf32> to vector<24x1xf32>
      %45 = arith.addf %37, %44 : vector<24x1xf32>
      %cst_29 = arith.constant 4.8828125E-4 : f32
      %46 = vector.broadcast %cst_29 : f32 to vector<24x1xf32>
      %47 = arith.mulf %45, %46 : vector<24x1xf32>
      %c0_30 = arith.constant 0 : index
      %c0_31 = arith.constant 0 : index
      %48 = vector.load %arg3[%c0_30, %c0_31] : memref<24x1xf32, #tpu.memory_space<vmem>>, vector<24x1xf32>
      %cst_32 = arith.constant 9.99999974E-6 : f32
      %49 = vector.broadcast %cst_32 : f32 to vector<24x1xf32>
      %50 = arith.addf %47, %49 : vector<24x1xf32>
      %51 = math.rsqrt %50 : vector<24x1xf32>
      %52 = arith.mulf %48, %51 : vector<24x1xf32>
      %c0_33 = arith.constant 0 : index
      %c0_34 = arith.constant 0 : index
      %53 = vector.load %arg4[%c0_33, %c0_34] : memref<24x1xf32, #tpu.memory_space<vmem>>, vector<24x1xf32>
      %54 = arith.mulf %30, %52 : vector<24x1xf32>
      %55 = arith.subf %53, %54 : vector<24x1xf32>
      %c0_35 = arith.constant 0 : index
      %c0_36 = arith.constant 0 : index
      %c0_37 = arith.constant 0 : index
      %56 = vector.load %arg5[%c0_35, %c0_36, %c0_37] : memref<2x24x1024xf32, #tpu.memory_space<vmem>>, vector<1x24x1024xf32>
      %57 = vector.shape_cast %56 : vector<1x24x1024xf32> to vector<24x1024xf32>
      %58 = vector.broadcast %52 : vector<24x1xf32> to vector<24x1024xf32>
      %59 = arith.mulf %57, %58 : vector<24x1024xf32>
      %60 = vector.broadcast %55 : vector<24x1xf32> to vector<24x1024xf32>
      %61 = arith.addf %59, %60 : vector<24x1024xf32>
      %cst_38 = arith.constant 0.000000e+00 : f32
      %62 = vector.broadcast %cst_38 : f32 to vector<24x1024xf32>
      %63 = arith.cmpf ogt, %61, %62 : vector<24x1024xf32>
      %cst_39 = arith.constant 1.000000e-01 : f32
      %64 = vector.broadcast %cst_39 : f32 to vector<24x1024xf32>
      %65 = arith.mulf %64, %61 : vector<24x1024xf32>
      %66 = arith.select %63, %61, %65 : vector<24x1024xi1>, vector<24x1024xf32>
      %c0_40 = arith.constant 0 : index
      %c0_41 = arith.constant 0 : index
      %c0_42 = arith.constant 0 : index
      %67 = vector.load %arg5[%c0_40, %c0_41, %c0_42] : memref<2x24x1024xf32, #tpu.memory_space<vmem>>, vector<1x24x1024xf32>
      %68 = vector.shape_cast %67 : vector<1x24x1024xf32> to vector<24x1024xf32>
      %69 = vector.shape_cast %66 : vector<24x1024xf32> to vector<1x24x1024xf32>
      tpu.vector_store %arg5[%c0_40, %c0_41, %c0_42], %69 {strides = array<i32>} : memref<2x24x1024xf32, #tpu.memory_space<vmem>>, vector<1x24x1024xf32>,
      %c1_43 = arith.constant 1 : index
      %c0_44 = arith.constant 0 : index
      %c0_45 = arith.constant 0 : index
      %70 = vector.load %arg5[%c1_43, %c0_44, %c0_45] : memref<2x24x1024xf32, #tpu.memory_space<vmem>>, vector<1x24x1024xf32>
      %71 = vector.shape_cast %70 : vector<1x24x1024xf32> to vector<24x1024xf32>
      %72 = vector.broadcast %52 : vector<24x1xf32> to vector<24x1024xf32>
      %73 = arith.mulf %71, %72 : vector<24x1024xf32>
      %74 = vector.broadcast %55 : vector<24x1xf32> to vector<24x1024xf32>
      %75 = arith.addf %73, %74 : vector<24x1024xf32>
      %cst_46 = arith.constant 0.000000e+00 : f32
      %76 = vector.broadcast %cst_46 : f32 to vector<24x1024xf32>
      %77 = arith.cmpf ogt, %75, %76 : vector<24x1024xf32>
      %cst_47 = arith.constant 1.000000e-01 : f32
      %78 = vector.broadcast %cst_47 : f32 to vector<24x1024xf32>
      %79 = arith.mulf %78, %75 : vector<24x1024xf32>
      %80 = arith.select %77, %75, %79 : vector<24x1024xi1>, vector<24x1024xf32>
      %c1_48 = arith.constant 1 : index
      %c0_49 = arith.constant 0 : index
      %c0_50 = arith.constant 0 : index
      %81 = vector.load %arg5[%c1_48, %c0_49, %c0_50] : memref<2x24x1024xf32, #tpu.memory_space<vmem>>, vector<1x24x1024xf32>
      %82 = vector.shape_cast %81 : vector<1x24x1024xf32> to vector<24x1024xf32>
      %83 = vector.shape_cast %80 : vector<24x1024xf32> to vector<1x24x1024xf32>
      tpu.vector_store %arg5[%c1_48, %c0_49, %c0_50], %83 {strides = array<i32>} : memref<2x24x1024xf32, #tpu.memory_space<vmem>>, vector<1x24x1024xf32>,
    } else {
    }
    return
  }
  func.func @transform_0(%arg0: i32) -> (i32, i32, i32) {
    %c0_i32 = arith.constant 0 : i32
    %c0_i32_0 = arith.constant 0 : i32
    %c0_i32_1 = arith.constant 0 : i32
    return %c0_i32, %c0_i32_0, %arg0 : i32, i32, i32
  }
  func.func @transform_1(%arg0: i32) -> (i32, i32) {
    %c0_i32 = arith.constant 0 : i32
    %c0_i32_0 = arith.constant 0 : i32
    %c0_i32_1 = arith.constant 0 : i32
    return %c0_i32, %c0_i32_0 : i32, i32
  }
  func.func @transform_2(%arg0: i32) -> (i32, i32) {
    %c0_i32 = arith.constant 0 : i32
    %c0_i32_0 = arith.constant 0 : i32
    %c0_i32_1 = arith.constant 0 : i32
    return %c0_i32, %c0_i32_0 : i32, i32
  }
  func.func @transform_3(%arg0: i32) -> (i32, i32) {
    %c0_i32 = arith.constant 0 : i32
    %c0_i32_0 = arith.constant 0 : i32
    %c0_i32_1 = arith.constant 0 : i32
    return %c0_i32, %c0_i32_0 : i32, i32
  }
  func.func @transform_4(%arg0: i32) -> (i32, i32, i32) {
    %c0_i32 = arith.constant 0 : i32
    %c0_i32_0 = arith.constant 0 : i32
    %c0_i32_1 = arith.constant 0 : i32
    %c0_i32_2 = arith.constant 0 : i32
    return %c0_i32, %c0_i32_0, %c0_i32_1 : i32, i32, i32
  }
}

</mosaic_0001>

<bundles_post_ra>
// kernel: tpu_custom_call.1
= control target key start
LH: loop header
LB: loop body
LE: loop exit
PB: predicated region body
PF: predicated region fallthrough
CT: control target
= control target key end

     0   :  { %9 = vsyncpa [#allocation3], 0  ;;  %s2976_s0 = inlined_call_operand.hbm [shape: f32[2,256,1024], index: 0, kind: input, shape index: {}]   ;;  %s2977_s1 = inlined_call_operand.hbm [shape: f32[24,256], index: 1, kind: input, shape index: {}]   ;;  %s2978_s2 = inlined_call_operand.vmem [shape: f32[24,1], index: 2, kind: input, shape index: {}]   ;;  %s2979_s3 = inlined_call_operand.vmem [shape: f32[24,1], index: 3, kind: input, shape index: {}]   ;;  %s2980_s4 = inlined_call_operand.hbm [shape: f32[2,24,1024], index: 4, kind: output, shape index: {}]  }
   0x1   :  { %10 = vsyncpa [#allocation6], 0 }
   0x2   :  { %11 = vsyncpa [#allocation4], 0  ;;  %s16_s17 = sshll.u32 %s2976_s0, 4  ;;  %s2242_s18 = smov [#allocation2]   ;;  %s17_s17 = int_to_ptr.hbm [resolvable:$true] %s16_s17 }
   0x3   :  { %s18_s19 = sshll.u32 %s2242_s18, 4  ;;  %s29_s22 = sshll.u32 %s2977_s1, 4  ;;  %s19_s19 = int_to_ptr.vmem [resolvable:$true] %s18_s19  ;;  %s30_s22 = int_to_ptr.hbm [resolvable:$true] %s29_s22 }
   0x4   :  { %s2243_s23 = smov 1024   ;;  %s2244_s24 = smov 64  }
   0x5   :  { %24 = dma.hbm_to_vmem [thread:$0]  %s17_s17, 65536, %s19_s19, [#allocation3], %s2243_s23, %s2243_s23, %s2244_s24  }
   0x6   :  { %s2245_s25 = smov [#allocation5]   ;;  %s2246_s27 = smov 256  }
   0x7   :  { %s31_s26 = sshll.u32 %s2245_s25, 4  ;;  %s2247_s0 = smov 16   ;;  %s32_s26 = int_to_ptr.vmem [resolvable:$true] %s31_s26 }
   0x8   :  { %37 = dma.hbm_to_vmem [thread:$0]  %s30_s22, 768, %s32_s26, [#allocation6], %s2246_s27, %s2246_s27, %s2247_s0  }
   0x9   :  { %2236 = dma.done.wait [#allocation3], 65536  }
   0xa   :  { %2237 = vsyncadd [#allocation3], 4294901760 }
   0xb   :  { %2238 = dma.done.wait [#allocation6], 768  }
   0xc   :  { %2239 = vsyncadd [#allocation6], 4294966528  ;;  %v177_v0 = vld [vmem:[#allocation2 + $0x3c0] sm:$0xff]  ;;  %v178_v2 = vld [vmem:[#allocation2 + $0x3c8] sm:$0xff]  ;;  %s2122_s15 = sshll.u32 %s2980_s4, 4  ;;  %s2123_s15 = int_to_ptr.hbm [resolvable:$true] %s2122_s15 }
   0xd   :  { %v305_v1 = vld [vmem:[#allocation2 + $0x7c0] sm:$0xff]  ;;  %313 = vmatpush.msra.mxu0 %v177_v0  ;;  %v306_v3 = vld [vmem:[#allocation2 + $0x7c8] sm:$0xff]  ;;  %365 = vmatpush.msra.mxu2 %v178_v2  ;;  %v179_v0 = vld [vmem:[#allocation2 + $0x3d0] sm:$0xff] }
   0xe   :  { %339 = vmatpush.msra.mxu1 %v305_v1  ;;  %v169_v4 = vld [vmem:[#allocation2 + $0x380] sm:$0xff]  ;;  %391 = vmatpush.msra.mxu3 %v306_v3  ;;  %v170_v6 = vld [vmem:[#allocation2 + $0x388] sm:$0xff]  ;;  %v307_v1 = vld [vmem:[#allocation2 + $0x7d0] sm:$0xff] }
   0xf   :  { %v297_v5 = vld [vmem:[#allocation2 + $0x780] sm:$0xff]  ;;  %v298_v7 = vld [vmem:[#allocation2 + $0x788] sm:$0xff]  ;;  %314 = vmatpush.msra.mxu0 %v169_v4  ;;  %366 = vmatpush.msra.mxu2 %v170_v6  ;;  %v180_v2 = vld [vmem:[#allocation2 + $0x3d8] sm:$0xff] }
  0x10   :  { %v161_v8 = vld [vmem:[#allocation2 + $0x340] sm:$0xff]  ;;  %340 = vmatpush.msra.mxu1 %v297_v5  ;;  %v162_v10 = vld [vmem:[#allocation2 + $0x348] sm:$0xff]  ;;  %392 = vmatpush.msra.mxu3 %v298_v7  ;;  %v308_v3 = vld [vmem:[#allocation2 + $0x7d8] sm:$0xff] }
  0x11   :  { %v289_v9 = vld [vmem:[#allocation2 + $0x740] sm:$0xff]  ;;  %v290_v11 = vld [vmem:[#allocation2 + $0x748] sm:$0xff]  ;;  %315 = vmatpush.msra.mxu0 %v161_v8  ;;  %367 = vmatpush.msra.mxu2 %v162_v10  ;;  %v171_v4 = vld [vmem:[#allocation2 + $0x390] sm:$0xff] }
  0x12   :  { %v153_v12 = vld [vmem:[#allocation2 + $0x300] sm:$0xff]  ;;  %341 = vmatpush.msra.mxu1 %v289_v9  ;;  %v154_v14 = vld [vmem:[#allocation2 + $0x308] sm:$0xff]  ;;  %393 = vmatpush.msra.mxu3 %v290_v11  ;;  %v299_v5 = vld [vmem:[#allocation2 + $0x790] sm:$0xff] }
  0x13   :  { %v281_v13 = vld [vmem:[#allocation2 + $0x700] sm:$0xff]  ;;  %v282_v15 = vld [vmem:[#allocation2 + $0x708] sm:$0xff]  ;;  %316 = vmatpush.msra.mxu0 %v153_v12  ;;  %368 = vmatpush.msra.mxu2 %v154_v14  ;;  %v172_v6 = vld [vmem:[#allocation2 + $0x398] sm:$0xff] }
  0x14   :  { %v145_v16 = vld [vmem:[#allocation2 + $0x2c0] sm:$0xff]  ;;  %342 = vmatpush.msra.mxu1 %v281_v13  ;;  %v146_v18 = vld [vmem:[#allocation2 + $0x2c8] sm:$0xff]  ;;  %394 = vmatpush.msra.mxu3 %v282_v15  ;;  %v300_v7 = vld [vmem:[#allocation2 + $0x798] sm:$0xff] }
  0x15   :  { %v273_v17 = vld [vmem:[#allocation2 + $0x6c0] sm:$0xff]  ;;  %v274_v19 = vld [vmem:[#allocation2 + $0x6c8] sm:$0xff]  ;;  %317 = vmatpush.msra.mxu0 %v145_v16  ;;  %369 = vmatpush.msra.mxu2 %v146_v18  ;;  %v163_v8 = vld [vmem:[#allocation2 + $0x350] sm:$0xff] }
  0x16   :  { %v137_v20 = vld [vmem:[#allocation2 + $0x280] sm:$0xff]  ;;  %343 = vmatpush.msra.mxu1 %v273_v17  ;;  %v138_v22 = vld [vmem:[#allocation2 + $0x288] sm:$0xff]  ;;  %395 = vmatpush.msra.mxu3 %v274_v19  ;;  %v291_v9 = vld [vmem:[#allocation2 + $0x750] sm:$0xff] }
  0x17   :  { %v265_v21 = vld [vmem:[#allocation2 + $0x680] sm:$0xff]  ;;  %v266_v23 = vld [vmem:[#allocation2 + $0x688] sm:$0xff]  ;;  %318 = vmatpush.msra.mxu0 %v137_v20  ;;  %370 = vmatpush.msra.mxu2 %v138_v22  ;;  %v164_v10 = vld [vmem:[#allocation2 + $0x358] sm:$0xff] }
  0x18   :  { %v129_v24 = vld [vmem:[#allocation2 + $0x240] sm:$0xff]  ;;  %344 = vmatpush.msra.mxu1 %v265_v21  ;;  %v130_v26 = vld [vmem:[#allocation2 + $0x248] sm:$0xff]  ;;  %396 = vmatpush.msra.mxu3 %v266_v23  ;;  %v292_v11 = vld [vmem:[#allocation2 + $0x758] sm:$0xff] }
  0x19   :  { %v257_v25 = vld [vmem:[#allocation2 + $0x640] sm:$0xff]  ;;  %v258_v27 = vld [vmem:[#allocation2 + $0x648] sm:$0xff]  ;;  %319 = vmatpush.msra.mxu0 %v129_v24  ;;  %371 = vmatpush.msra.mxu2 %v130_v26  ;;  %v155_v12 = vld [vmem:[#allocation2 + $0x310] sm:$0xff] }
  0x1a   :  { %v121_v28 = vld [vmem:[#allocation2 + $0x200] sm:$0xff]  ;;  %345 = vmatpush.msra.mxu1 %v257_v25  ;;  %v122_v30 = vld [vmem:[#allocation2 + $0x208] sm:$0xff]  ;;  %397 = vmatpush.msra.mxu3 %v258_v27  ;;  %v283_v13 = vld [vmem:[#allocation2 + $0x710] sm:$0xff] }
  0x1b   :  { %v249_v29 = vld [vmem:[#allocation2 + $0x600] sm:$0xff]  ;;  %v250_v31 = vld [vmem:[#allocation2 + $0x608] sm:$0xff]  ;;  %320 = vmatpush.msra.mxu0 %v121_v28  ;;  %372 = vmatpush.msra.mxu2 %v122_v30  ;;  %v156_v14 = vld [vmem:[#allocation2 + $0x318] sm:$0xff] }
  0x1c   :  { %v113_v32 = vld [vmem:[#allocation2 + $0x1c0] sm:$0xff]  ;;  %346 = vmatpush.msra.mxu1 %v249_v29  ;;  %v114_v34 = vld [vmem:[#allocation2 + $0x1c8] sm:$0xff]  ;;  %398 = vmatpush.msra.mxu3 %v250_v31  ;;  %v284_v15 = vld [vmem:[#allocation2 + $0x718] sm:$0xff] }
  0x1d   :  { %v241_v33 = vld [vmem:[#allocation2 + $0x5c0] sm:$0xff]  ;;  %v242_v35 = vld [vmem:[#allocation2 + $0x5c8] sm:$0xff]  ;;  %321 = vmatpush.msra.mxu0 %v113_v32  ;;  %373 = vmatpush.msra.mxu2 %v114_v34  ;;  %v147_v16 = vld [vmem:[#allocation2 + $0x2d0] sm:$0xff] }
  0x1e   :  { %v105_v36 = vld [vmem:[#allocation2 + $0x180] sm:$0xff]  ;;  %347 = vmatpush.msra.mxu1 %v241_v33  ;;  %v106_v38 = vld [vmem:[#allocation2 + $0x188] sm:$0xff]  ;;  %399 = vmatpush.msra.mxu3 %v242_v35  ;;  %v275_v17 = vld [vmem:[#allocation2 + $0x6d0] sm:$0xff] }
  0x1f   :  { %v233_v37 = vld [vmem:[#allocation2 + $0x580] sm:$0xff]  ;;  %v234_v39 = vld [vmem:[#allocation2 + $0x588] sm:$0xff]  ;;  %322 = vmatpush.msra.mxu0 %v105_v36  ;;  %374 = vmatpush.msra.mxu2 %v106_v38  ;;  %v148_v18 = vld [vmem:[#allocation2 + $0x2d8] sm:$0xff] }
  0x20   :  { %v97_v40 = vld [vmem:[#allocation2 + $0x140] sm:$0xff]  ;;  %348 = vmatpush.msra.mxu1 %v233_v37  ;;  %v98_v42 = vld [vmem:[#allocation2 + $0x148] sm:$0xff]  ;;  %400 = vmatpush.msra.mxu3 %v234_v39  ;;  %v276_v19 = vld [vmem:[#allocation2 + $0x6d8] sm:$0xff] }
  0x21   :  { %v225_v41 = vld [vmem:[#allocation2 + $0x540] sm:$0xff]  ;;  %v226_v43 = vld [vmem:[#allocation2 + $0x548] sm:$0xff]  ;;  %323 = vmatpush.msra.mxu0 %v97_v40  ;;  %375 = vmatpush.msra.mxu2 %v98_v42  ;;  %v139_v22 = vld [vmem:[#allocation2 + $0x290] sm:$0xff] }
  0x22   :  { %v89_v44 = vld [vmem:[#allocation2 + $0x100] sm:$0xff]  ;;  %349 = vmatpush.msra.mxu1 %v225_v41  ;;  %v90_v46 = vld [vmem:[#allocation2 + $0x108] sm:$0xff]  ;;  %401 = vmatpush.msra.mxu3 %v226_v43  ;;  %v267_v23 = vld [vmem:[#allocation2 + $0x690] sm:$0xff] }
  0x23   :  { %v217_v45 = vld [vmem:[#allocation2 + $0x500] sm:$0xff]  ;;  %v218_v47 = vld [vmem:[#allocation2 + $0x508] sm:$0xff]  ;;  %324 = vmatpush.msra.mxu0 %v89_v44  ;;  %376 = vmatpush.msra.mxu2 %v90_v46  ;;  %v140_v24 = vld [vmem:[#allocation2 + $0x298] sm:$0xff] }
  0x24   :  { %v81_v48 = vld [vmem:[#allocation2 + $0xc0] sm:$0xff]  ;;  %350 = vmatpush.msra.mxu1 %v217_v45  ;;  %v82_v50 = vld [vmem:[#allocation2 + $0xc8] sm:$0xff]  ;;  %402 = vmatpush.msra.mxu3 %v218_v47  ;;  %v268_v25 = vld [vmem:[#allocation2 + $0x698] sm:$0xff] }
  0x25   :  { %v209_v49 = vld [vmem:[#allocation2 + $0x4c0] sm:$0xff]  ;;  %v210_v51 = vld [vmem:[#allocation2 + $0x4c8] sm:$0xff]  ;;  %325 = vmatpush.msra.mxu0 %v81_v48  ;;  %377 = vmatpush.msra.mxu2 %v82_v50  ;;  %v131_v26 = vld [vmem:[#allocation2 + $0x250] sm:$0xff] }
  0x26   :  { %v73_v52 = vld [vmem:[#allocation2 + $0x80] sm:$0xff]  ;;  %351 = vmatpush.msra.mxu1 %v209_v49  ;;  %v74_v54 = vld [vmem:[#allocation2 + $0x88] sm:$0xff]  ;;  %403 = vmatpush.msra.mxu3 %v210_v51  ;;  %v259_v27 = vld [vmem:[#allocation2 + $0x650] sm:$0xff] }
  0x27   :  { %v201_v53 = vld [vmem:[#allocation2 + $0x480] sm:$0xff]  ;;  %v202_v55 = vld [vmem:[#allocation2 + $0x488] sm:$0xff]  ;;  %326 = vmatpush.msra.mxu0 %v73_v52  ;;  %378 = vmatpush.msra.mxu2 %v74_v54  ;;  %v132_v28 = vld [vmem:[#allocation2 + $0x258] sm:$0xff] }
  0x28   :  { %v65_v56 = vld [vmem:[#allocation2 + $0x40] sm:$0xff]  ;;  %352 = vmatpush.msra.mxu1 %v201_v53  ;;  %v66_v58 = vld [vmem:[#allocation2 + $0x48] sm:$0xff]  ;;  %404 = vmatpush.msra.mxu3 %v202_v55  ;;  %v260_v29 = vld [vmem:[#allocation2 + $0x658] sm:$0xff] }
  0x29   :  { %v193_v57 = vld [vmem:[#allocation2 + $0x440] sm:$0xff]  ;;  %v194_v59 = vld [vmem:[#allocation2 + $0x448] sm:$0xff]  ;;  %327 = vmatpush.msra.mxu0 %v65_v56  ;;  %379 = vmatpush.msra.mxu2 %v66_v58  ;;  %v123_v30 = vld [vmem:[#allocation2 + $0x210] sm:$0xff] }
  0x2a   :  { %v57_v60 = vld [vmem:[#allocation2] sm:$0xff]  ;;  %353 = vmatpush.msra.mxu1 %v193_v57  ;;  %v58_v62 = vld [vmem:[#allocation2 + $0x8] sm:$0xff]  ;;  %405 = vmatpush.msra.mxu3 %v194_v59  ;;  %v251_v31 = vld [vmem:[#allocation2 + $0x610] sm:$0xff] }
  0x2b   :  { %v185_v61 = vld [vmem:[#allocation2 + $0x400] sm:$0xff]  ;;  %v186_v63 = vld [vmem:[#allocation2 + $0x408] sm:$0xff]  ;;  %328 = vmatpush.msra.mxu0 %v57_v60  ;;  %380 = vmatpush.msra.mxu2 %v58_v62  ;;  %v124_v32 = vld [vmem:[#allocation2 + $0x218] sm:$0xff] }
  0x2c   :  { %354 = vmatpush.msra.mxu1 %v185_v61  ;;  %406 = vmatpush.msra.mxu3 %v186_v63  ;;  %v2284_v20 = vld [vmem:[#allocation5] sm:$0xff]  ;;  %v2286_v21 = vld [vmem:[#allocation5 + $0x8] sm:$0xff]  ;;  %v252_v33 = vld [vmem:[#allocation2 + $0x618] sm:$0xff] }
  0x2d   :  { %417 = vmatpush.msrb.mxu0 %v179_v0  ;;  %469 = vmatpush.msrb.mxu2 %v180_v2  ;;  %v115_v34 = vld [vmem:[#allocation2 + $0x1d0] sm:$0xff]  ;;  %v116_v36 = vld [vmem:[#allocation2 + $0x1d8] sm:$0xff]  ;;  %v2300_v56 = vld [vmem:[#allocation5 + $0x20] sm:$0xff] }
  0x2e   :  { %443 = vmatpush.msrb.mxu1 %v307_v1  ;;  %495 = vmatpush.msrb.mxu3 %v308_v3  ;;  %v243_v35 = vld [vmem:[#allocation2 + $0x5d0] sm:$0xff]  ;;  %v244_v37 = vld [vmem:[#allocation2 + $0x5d8] sm:$0xff]  ;;  %v2302_v57 = vld [vmem:[#allocation5 + $0x28] sm:$0xff] }
  0x2f   :  { %418 = vmatpush.msrb.mxu0 %v171_v4  ;;  %470 = vmatpush.msrb.mxu2 %v172_v6  ;;  %v2292_v38 = vld [vmem:[#allocation5 + $0x10] sm:$0xff]  ;;  %v2294_v39 = vld [vmem:[#allocation5 + $0x18] sm:$0xff]  ;;  %v181_v6 = vld [vmem:[#allocation2 + $0x3e0] sm:$0xff] }
  0x30   :  { %444 = vmatpush.msrb.mxu1 %v299_v5  ;;  %496 = vmatpush.msrb.mxu3 %v300_v7  ;;  %v107_v40 = vld [vmem:[#allocation2 + $0x190] sm:$0xff]  ;;  %v108_v42 = vld [vmem:[#allocation2 + $0x198] sm:$0xff]  ;;  %v309_v7 = vld [vmem:[#allocation2 + $0x7e0] sm:$0xff] }
  0x31   :  { %419 = vmatpush.msrb.mxu0 %v163_v8  ;;  %471 = vmatpush.msrb.mxu2 %v164_v10  ;;  %v235_v41 = vld [vmem:[#allocation2 + $0x590] sm:$0xff]  ;;  %v236_v43 = vld [vmem:[#allocation2 + $0x598] sm:$0xff]  ;;  %v182_v8 = vld [vmem:[#allocation2 + $0x3e8] sm:$0xff] }
  0x32   :  { %445 = vmatpush.msrb.mxu1 %v291_v9  ;;  %497 = vmatpush.msrb.mxu3 %v292_v11  ;;  %v99_v44 = vld [vmem:[#allocation2 + $0x150] sm:$0xff]  ;;  %v100_v46 = vld [vmem:[#allocation2 + $0x158] sm:$0xff]  ;;  %v310_v9 = vld [vmem:[#allocation2 + $0x7e8] sm:$0xff] }
  0x33   :  { %420 = vmatpush.msrb.mxu0 %v155_v12  ;;  %472 = vmatpush.msrb.mxu2 %v156_v14  ;;  %v227_v45 = vld [vmem:[#allocation2 + $0x550] sm:$0xff]  ;;  %v228_v47 = vld [vmem:[#allocation2 + $0x558] sm:$0xff]  ;;  %v173_v10 = vld [vmem:[#allocation2 + $0x3a0] sm:$0xff] }
  0x34   :  { %446 = vmatpush.msrb.mxu1 %v283_v13  ;;  %498 = vmatpush.msrb.mxu3 %v284_v15  ;;  %v91_v48 = vld [vmem:[#allocation2 + $0x110] sm:$0xff]  ;;  %v92_v50 = vld [vmem:[#allocation2 + $0x118] sm:$0xff]  ;;  %v301_v11 = vld [vmem:[#allocation2 + $0x7a0] sm:$0xff] }
  0x35   :  { %421 = vmatpush.msrb.mxu0 %v147_v16  ;;  %473 = vmatpush.msrb.mxu2 %v148_v18  ;;  %v219_v49 = vld [vmem:[#allocation2 + $0x510] sm:$0xff]  ;;  %v220_v51 = vld [vmem:[#allocation2 + $0x518] sm:$0xff]  ;;  %v174_v12 = vld [vmem:[#allocation2 + $0x3a8] sm:$0xff] }
  0x36   :  { %447 = vmatpush.msrb.mxu1 %v275_v17  ;;  %499 = vmatpush.msrb.mxu3 %v276_v19  ;;  %v83_v52 = vld [vmem:[#allocation2 + $0xd0] sm:$0xff]  ;;  %v84_v54 = vld [vmem:[#allocation2 + $0xd8] sm:$0xff]  ;;  %v302_v13 = vld [vmem:[#allocation2 + $0x7a8] sm:$0xff] }
  0x37   :  { %381 = vmatmul.f32.vlgmr.msra.gmra.mxu2 %v2284_v20  ;;  %407 = vmatmul.f32.vlgmr.msra.gmra.mxu3 %v2286_v21  ;;  %v211_v53 = vld [vmem:[#allocation2 + $0x4d0] sm:$0xff]  ;;  %v212_v55 = vld [vmem:[#allocation2 + $0x4d8] sm:$0xff]  ;;  %v165_v14 = vld [vmem:[#allocation2 + $0x360] sm:$0xff] }
  0x38   :  { %422 = vmatpush.msrb.mxu0 %v139_v22  ;;  %448 = vmatpush.msrb.mxu1 %v267_v23  ;;  %v75_v58 = vld [vmem:[#allocation2 + $0x90] sm:$0xff]  ;;  %v76_v60 = vld [vmem:[#allocation2 + $0x98] sm:$0xff]  ;;  %v293_v15 = vld [vmem:[#allocation2 + $0x760] sm:$0xff] }
  0x39   :  { %474 = vmatpush.msrb.mxu2 %v140_v24  ;;  %500 = vmatpush.msrb.mxu3 %v268_v25  ;;  %v203_v59 = vld [vmem:[#allocation2 + $0x490] sm:$0xff]  ;;  %v204_v61 = vld [vmem:[#allocation2 + $0x498] sm:$0xff]  ;;  %v166_v16 = vld [vmem:[#allocation2 + $0x368] sm:$0xff] }
  0x3a   :  { %423 = vmatpush.msrb.mxu0 %v131_v26  ;;  %449 = vmatpush.msrb.mxu1 %v259_v27  ;;  %v67_v62 = vld [vmem:[#allocation2 + $0x50] sm:$0xff]  ;;  %v68_v0 = vld [vmem:[#allocation2 + $0x58] sm:$0xff]  ;;  %v294_v17 = vld [vmem:[#allocation2 + $0x768] sm:$0xff] }
  0x3b   :  { %475 = vmatpush.msrb.mxu2 %v132_v28  ;;  %501 = vmatpush.msrb.mxu3 %v260_v29  ;;  %v195_v63 = vld [vmem:[#allocation2 + $0x450] sm:$0xff]  ;;  %v196_v1 = vld [vmem:[#allocation2 + $0x458] sm:$0xff]  ;;  %v157_v18 = vld [vmem:[#allocation2 + $0x320] sm:$0xff] }
  0x3c   :  { %329 = vmatmul.f32.vlgmr.msra.gmra.mxu0 %v2284_v20  ;;  %355 = vmatmul.f32.vlgmr.msra.gmra.mxu1 %v2286_v21  ;;  %v59_v2 = vld [vmem:[#allocation2 + $0x10] sm:$0xff]  ;;  %v60_v4 = vld [vmem:[#allocation2 + $0x18] sm:$0xff]  ;;  %v285_v19 = vld [vmem:[#allocation2 + $0x720] sm:$0xff] }
  0x3d   :  { %424 = vmatpush.msrb.mxu0 %v123_v30  ;;  %450 = vmatpush.msrb.mxu1 %v251_v31  ;;  %v187_v3 = vld [vmem:[#allocation2 + $0x410] sm:$0xff]  ;;  %v188_v5 = vld [vmem:[#allocation2 + $0x418] sm:$0xff]  ;;  %v158_v22 = vld [vmem:[#allocation2 + $0x328] sm:$0xff] }
  0x3e   :  { %476 = vmatpush.msrb.mxu2 %v124_v32  ;;  %502 = vmatpush.msrb.mxu3 %v252_v33  ;;  %v286_v23 = vld [vmem:[#allocation2 + $0x728] sm:$0xff]  ;;  %v149_v24 = vld [vmem:[#allocation2 + $0x2e0] sm:$0xff] }
  0x3f   :  { %425 = vmatpush.msrb.mxu0 %v115_v34  ;;  %451 = vmatpush.msrb.mxu1 %v243_v35  ;;  %v277_v25 = vld [vmem:[#allocation2 + $0x6e0] sm:$0xff]  ;;  %v150_v26 = vld [vmem:[#allocation2 + $0x2e8] sm:$0xff] }
  0x40   :  { %477 = vmatpush.msrb.mxu2 %v116_v36  ;;  %503 = vmatpush.msrb.mxu3 %v244_v37  ;;  %v278_v27 = vld [vmem:[#allocation2 + $0x6e8] sm:$0xff]  ;;  %v141_v28 = vld [vmem:[#allocation2 + $0x2a0] sm:$0xff] }
  0x41   :  { %384 = vmatmul.f32.gmra.mxu2 %v2292_v38  ;;  %410 = vmatmul.f32.gmra.mxu3 %v2294_v39  ;;  %v269_v29 = vld [vmem:[#allocation2 + $0x6a0] sm:$0xff]  ;;  %v142_v30 = vld [vmem:[#allocation2 + $0x2a8] sm:$0xff] }
  0x42   :  { %426 = vmatpush.msrb.mxu0 %v107_v40  ;;  %452 = vmatpush.msrb.mxu1 %v235_v41  ;;  %v270_v31 = vld [vmem:[#allocation2 + $0x6a8] sm:$0xff]  ;;  %v133_v32 = vld [vmem:[#allocation2 + $0x260] sm:$0xff] }
  0x43   :  { %478 = vmatpush.msrb.mxu2 %v108_v42  ;;  %504 = vmatpush.msrb.mxu3 %v236_v43  ;;  %v261_v33 = vld [vmem:[#allocation2 + $0x660] sm:$0xff]  ;;  %v134_v34 = vld [vmem:[#allocation2 + $0x268] sm:$0xff] }
  0x44   :  { %427 = vmatpush.msrb.mxu0 %v99_v44  ;;  %453 = vmatpush.msrb.mxu1 %v227_v45  ;;  %v262_v35 = vld [vmem:[#allocation2 + $0x668] sm:$0xff]  ;;  %v125_v36 = vld [vmem:[#allocation2 + $0x220] sm:$0xff] }
  0x45   :  { %479 = vmatpush.msrb.mxu2 %v100_v46  ;;  %505 = vmatpush.msrb.mxu3 %v228_v47  ;;  %v253_v37 = vld [vmem:[#allocation2 + $0x620] sm:$0xff]  ;;  %v126_v40 = vld [vmem:[#allocation2 + $0x228] sm:$0xff] }
  0x46   :  { %332 = vmatmul.f32.gmra.mxu0 %v2292_v38  ;;  %358 = vmatmul.f32.gmra.mxu1 %v2294_v39  ;;  %v254_v41 = vld [vmem:[#allocation2 + $0x628] sm:$0xff]  ;;  %v117_v42 = vld [vmem:[#allocation2 + $0x1e0] sm:$0xff] }
  0x47   :  { %428 = vmatpush.msrb.mxu0 %v91_v48  ;;  %454 = vmatpush.msrb.mxu1 %v219_v49  ;;  %v245_v43 = vld [vmem:[#allocation2 + $0x5e0] sm:$0xff]  ;;  %v118_v44 = vld [vmem:[#allocation2 + $0x1e8] sm:$0xff] }
  0x48   :  { %480 = vmatpush.msrb.mxu2 %v92_v50  ;;  %506 = vmatpush.msrb.mxu3 %v220_v51  ;;  %v246_v45 = vld [vmem:[#allocation2 + $0x5e8] sm:$0xff]  ;;  %v109_v46 = vld [vmem:[#allocation2 + $0x1a0] sm:$0xff] }
  0x49   :  { %429 = vmatpush.msrb.mxu0 %v83_v52  ;;  %455 = vmatpush.msrb.mxu1 %v211_v53  ;;  %v237_v47 = vld [vmem:[#allocation2 + $0x5a0] sm:$0xff]  ;;  %v110_v48 = vld [vmem:[#allocation2 + $0x1a8] sm:$0xff] }
  0x4a   :  { %481 = vmatpush.msrb.mxu2 %v84_v54  ;;  %507 = vmatpush.msrb.mxu3 %v212_v55  ;;  %v238_v49 = vld [vmem:[#allocation2 + $0x5a8] sm:$0xff]  ;;  %v101_v50 = vld [vmem:[#allocation2 + $0x160] sm:$0xff] }
  0x4b   :  { %387 = vmatmul.f32.gmra.mxu2 %v2300_v56  ;;  %413 = vmatmul.f32.gmra.mxu3 %v2302_v57  ;;  %v229_v51 = vld [vmem:[#allocation2 + $0x560] sm:$0xff]  ;;  %v102_v52 = vld [vmem:[#allocation2 + $0x168] sm:$0xff] }
  0x4c   :  { %430 = vmatpush.msrb.mxu0 %v75_v58  ;;  %456 = vmatpush.msrb.mxu1 %v203_v59  ;;  %v230_v53 = vld [vmem:[#allocation2 + $0x568] sm:$0xff]  ;;  %v93_v54 = vld [vmem:[#allocation2 + $0x120] sm:$0xff] }
  0x4d   :  { %482 = vmatpush.msrb.mxu2 %v76_v60  ;;  %508 = vmatpush.msrb.mxu3 %v204_v61  ;;  %v221_v55 = vld [vmem:[#allocation2 + $0x520] sm:$0xff]  ;;  %v94_v58 = vld [vmem:[#allocation2 + $0x128] sm:$0xff] }
  0x4e   :  { %431 = vmatpush.msrb.mxu0 %v67_v62  ;;  %457 = vmatpush.msrb.mxu1 %v195_v63  ;;  %v222_v59 = vld [vmem:[#allocation2 + $0x528] sm:$0xff]  ;;  %v85_v60 = vld [vmem:[#allocation2 + $0xe0] sm:$0xff] }
  0x4f   :  { %483 = vmatpush.msrb.mxu2 %v68_v0  ;;  %509 = vmatpush.msrb.mxu3 %v196_v1  ;;  %v213_v61 = vld [vmem:[#allocation2 + $0x4e0] sm:$0xff]  ;;  %v86_v62 = vld [vmem:[#allocation2 + $0xe8] sm:$0xff] }
  0x50   :  { %335 = vmatmul.f32.gmra.mxu0 %v2300_v56  ;;  %361 = vmatmul.f32.gmra.mxu1 %v2302_v57  ;;  %v214_v63 = vld [vmem:[#allocation2 + $0x4e8] sm:$0xff]  ;;  %v77_v0 = vld [vmem:[#allocation2 + $0xa0] sm:$0xff] }
  0x51   :  { %432 = vmatpush.msrb.mxu0 %v59_v2  ;;  %458 = vmatpush.msrb.mxu1 %v187_v3  ;;  %v205_v1 = vld [vmem:[#allocation2 + $0x4a0] sm:$0xff]  ;;  %v78_v2 = vld [vmem:[#allocation2 + $0xa8] sm:$0xff] }
  0x52   :  { %484 = vmatpush.msrb.mxu2 %v60_v4  ;;  %510 = vmatpush.msrb.mxu3 %v188_v5  ;;  %v206_v3 = vld [vmem:[#allocation2 + $0x4a8] sm:$0xff]  ;;  %v69_v4 = vld [vmem:[#allocation2 + $0x60] sm:$0xff] }
  0x53   :  { %521 = vmatpush.msra.mxu0 %v181_v6  ;;  %547 = vmatpush.msra.mxu1 %v309_v7  ;;  %v197_v5 = vld [vmem:[#allocation2 + $0x460] sm:$0xff]  ;;  %v70_v6 = vld [vmem:[#allocation2 + $0x68] sm:$0xff] }
  0x54   :  { %573 = vmatpush.msra.mxu2 %v182_v8  ;;  %599 = vmatpush.msra.mxu3 %v310_v9  ;;  %v198_v7 = vld [vmem:[#allocation2 + $0x468] sm:$0xff]  ;;  %v61_v8 = vld [vmem:[#allocation2 + $0x20] sm:$0xff] }
  0x55   :  { %485 = vmatmul.f32.vlgmr.msrb.gmra.mxu2 %v2284_v20  ;;  %511 = vmatmul.f32.vlgmr.msrb.gmra.mxu3 %v2286_v21  ;;  %v189_v9 = vld [vmem:[#allocation2 + $0x420] sm:$0xff] }
  0x56   :  { %522 = vmatpush.msra.mxu0 %v173_v10  ;;  %548 = vmatpush.msra.mxu1 %v301_v11  ;;  %v62_v10 = vld [vmem:[#allocation2 + $0x28] sm:$0xff] }
  0x57   :  { %574 = vmatpush.msra.mxu2 %v174_v12  ;;  %600 = vmatpush.msra.mxu3 %v302_v13  ;;  %v190_v11 = vld [vmem:[#allocation2 + $0x428] sm:$0xff]  ;;  %v183_v12 = vld [vmem:[#allocation2 + $0x3f0] sm:$0xff] }
  0x58   :  { %523 = vmatpush.msra.mxu0 %v165_v14  ;;  %549 = vmatpush.msra.mxu1 %v293_v15  ;;  %v311_v13 = vld [vmem:[#allocation2 + $0x7f0] sm:$0xff]  ;;  %v184_v14 = vld [vmem:[#allocation2 + $0x3f8] sm:$0xff] }
  0x59   :  { %575 = vmatpush.msra.mxu2 %v166_v16  ;;  %601 = vmatpush.msra.mxu3 %v294_v17  ;;  %v312_v15 = vld [vmem:[#allocation2 + $0x7f8] sm:$0xff]  ;;  %v175_v16 = vld [vmem:[#allocation2 + $0x3b0] sm:$0xff] }
  0x5a   :  { %433 = vmatmul.f32.vlgmr.msrb.gmra.mxu0 %v2284_v20  ;;  %459 = vmatmul.f32.vlgmr.msrb.gmra.mxu1 %v2286_v21  ;;  %v303_v17 = vld [vmem:[#allocation2 + $0x7b0] sm:$0xff] }
  0x5b   :  { %524 = vmatpush.msra.mxu0 %v157_v18  ;;  %550 = vmatpush.msra.mxu1 %v285_v19  ;;  %v176_v18 = vld [vmem:[#allocation2 + $0x3b8] sm:$0xff] }
  0x5c   :  { %576 = vmatpush.msra.mxu2 %v158_v22  ;;  %602 = vmatpush.msra.mxu3 %v286_v23  ;;  %v304_v19 = vld [vmem:[#allocation2 + $0x7b8] sm:$0xff]  ;;  %v167_v22 = vld [vmem:[#allocation2 + $0x370] sm:$0xff] }
  0x5d   :  { %525 = vmatpush.msra.mxu0 %v149_v24  ;;  %551 = vmatpush.msra.mxu1 %v277_v25  ;;  %v295_v23 = vld [vmem:[#allocation2 + $0x770] sm:$0xff]  ;;  %v168_v24 = vld [vmem:[#allocation2 + $0x378] sm:$0xff] }
  0x5e   :  { %577 = vmatpush.msra.mxu2 %v150_v26  ;;  %603 = vmatpush.msra.mxu3 %v278_v27  ;;  %v296_v25 = vld [vmem:[#allocation2 + $0x778] sm:$0xff]  ;;  %v159_v26 = vld [vmem:[#allocation2 + $0x330] sm:$0xff] }
  0x5f   :  { %526 = vmatpush.msra.mxu0 %v141_v28  ;;  %552 = vmatpush.msra.mxu1 %v269_v29  ;;  %v287_v27 = vld [vmem:[#allocation2 + $0x730] sm:$0xff]  ;;  %v160_v28 = vld [vmem:[#allocation2 + $0x338] sm:$0xff] }
  0x60   :  { %578 = vmatpush.msra.mxu2 %v142_v30  ;;  %604 = vmatpush.msra.mxu3 %v270_v31  ;;  %v288_v29 = vld [vmem:[#allocation2 + $0x738] sm:$0xff]  ;;  %v151_v30 = vld [vmem:[#allocation2 + $0x2f0] sm:$0xff] }
  0x61   :  { %527 = vmatpush.msra.mxu0 %v133_v32  ;;  %553 = vmatpush.msra.mxu1 %v261_v33  ;;  %v279_v31 = vld [vmem:[#allocation2 + $0x6f0] sm:$0xff]  ;;  %v152_v32 = vld [vmem:[#allocation2 + $0x2f8] sm:$0xff] }
  0x62   :  { %579 = vmatpush.msra.mxu2 %v134_v34  ;;  %605 = vmatpush.msra.mxu3 %v262_v35  ;;  %v280_v33 = vld [vmem:[#allocation2 + $0x6f8] sm:$0xff]  ;;  %v143_v34 = vld [vmem:[#allocation2 + $0x2b0] sm:$0xff] }
  0x63   :  { %528 = vmatpush.msra.mxu0 %v125_v36  ;;  %554 = vmatpush.msra.mxu1 %v253_v37  ;;  %v271_v35 = vld [vmem:[#allocation2 + $0x6b0] sm:$0xff]  ;;  %v144_v36 = vld [vmem:[#allocation2 + $0x2b8] sm:$0xff] }
  0x64   :  { %580 = vmatpush.msra.mxu2 %v126_v40  ;;  %606 = vmatpush.msra.mxu3 %v254_v41  ;;  %v272_v37 = vld [vmem:[#allocation2 + $0x6b8] sm:$0xff]  ;;  %v135_v40 = vld [vmem:[#allocation2 + $0x270] sm:$0xff] }
  0x65   :  { %436 = vmatmul.f32.gmra.mxu0 %v2292_v38  ;;  %462 = vmatmul.f32.gmra.mxu1 %v2294_v39  ;;  %v263_v41 = vld [vmem:[#allocation2 + $0x670] sm:$0xff] }
  0x66   :  { %488 = vmatmul.f32.gmra.mxu2 %v2292_v38  ;;  %514 = vmatmul.f32.gmra.mxu3 %v2294_v39 }
  0x67   :  { %529 = vmatpush.msra.mxu0 %v117_v42  ;;  %555 = vmatpush.msra.mxu1 %v245_v43  ;;  %v136_v42 = vld [vmem:[#allocation2 + $0x278] sm:$0xff] }
  0x68   :  { %581 = vmatpush.msra.mxu2 %v118_v44  ;;  %607 = vmatpush.msra.mxu3 %v246_v45  ;;  %v264_v43 = vld [vmem:[#allocation2 + $0x678] sm:$0xff]  ;;  %v127_v44 = vld [vmem:[#allocation2 + $0x230] sm:$0xff] }
  0x69   :  { %530 = vmatpush.msra.mxu0 %v109_v46  ;;  %556 = vmatpush.msra.mxu1 %v237_v47  ;;  %v255_v45 = vld [vmem:[#allocation2 + $0x630] sm:$0xff]  ;;  %v128_v46 = vld [vmem:[#allocation2 + $0x238] sm:$0xff] }
  0x6a   :  { %582 = vmatpush.msra.mxu2 %v110_v48  ;;  %608 = vmatpush.msra.mxu3 %v238_v49  ;;  %v256_v47 = vld [vmem:[#allocation2 + $0x638] sm:$0xff]  ;;  %v119_v48 = vld [vmem:[#allocation2 + $0x1f0] sm:$0xff] }
  0x6b   :  { %531 = vmatpush.msra.mxu0 %v101_v50  ;;  %557 = vmatpush.msra.mxu1 %v229_v51  ;;  %v247_v49 = vld [vmem:[#allocation2 + $0x5f0] sm:$0xff]  ;;  %v120_v50 = vld [vmem:[#allocation2 + $0x1f8] sm:$0xff] }
  0x6c   :  { %583 = vmatpush.msra.mxu2 %v102_v52  ;;  %609 = vmatpush.msra.mxu3 %v230_v53  ;;  %v248_v51 = vld [vmem:[#allocation2 + $0x5f8] sm:$0xff]  ;;  %v111_v52 = vld [vmem:[#allocation2 + $0x1b0] sm:$0xff] }
  0x6d   :  { %532 = vmatpush.msra.mxu0 %v93_v54  ;;  %558 = vmatpush.msra.mxu1 %v221_v55  ;;  %v239_v53 = vld [vmem:[#allocation2 + $0x5b0] sm:$0xff]  ;;  %v112_v54 = vld [vmem:[#allocation2 + $0x1b8] sm:$0xff] }
  0x6e   :  { %584 = vmatpush.msra.mxu2 %v94_v58  ;;  %610 = vmatpush.msra.mxu3 %v222_v59  ;;  %v240_v55 = vld [vmem:[#allocation2 + $0x5b8] sm:$0xff]  ;;  %v103_v58 = vld [vmem:[#allocation2 + $0x170] sm:$0xff] }
  0x6f   :  { %439 = vmatmul.f32.gmra.mxu0 %v2300_v56  ;;  %465 = vmatmul.f32.gmra.mxu1 %v2302_v57  ;;  %v231_v59 = vld [vmem:[#allocation2 + $0x570] sm:$0xff] }
  0x70   :  { %491 = vmatmul.f32.gmra.mxu2 %v2300_v56  ;;  %517 = vmatmul.f32.gmra.mxu3 %v2302_v57 }
  0x71   :  { %533 = vmatpush.msra.mxu0 %v85_v60  ;;  %559 = vmatpush.msra.mxu1 %v213_v61  ;;  %v104_v60 = vld [vmem:[#allocation2 + $0x178] sm:$0xff] }
  0x72   :  { %585 = vmatpush.msra.mxu2 %v86_v62  ;;  %611 = vmatpush.msra.mxu3 %v214_v63  ;;  %v232_v61 = vld [vmem:[#allocation2 + $0x578] sm:$0xff]  ;;  %v95_v62 = vld [vmem:[#allocation2 + $0x130] sm:$0xff] }
  0x73   :  { %534 = vmatpush.msra.mxu0 %v77_v0  ;;  %560 = vmatpush.msra.mxu1 %v205_v1  ;;  %v223_v63 = vld [vmem:[#allocation2 + $0x530] sm:$0xff]  ;;  %v96_v0 = vld [vmem:[#allocation2 + $0x138] sm:$0xff] }
  0x74   :  { %586 = vmatpush.msra.mxu2 %v78_v2  ;;  %612 = vmatpush.msra.mxu3 %v206_v3  ;;  %v224_v1 = vld [vmem:[#allocation2 + $0x538] sm:$0xff]  ;;  %v87_v2 = vld [vmem:[#allocation2 + $0xf0] sm:$0xff] }
  0x75   :  { %535 = vmatpush.msra.mxu0 %v69_v4  ;;  %561 = vmatpush.msra.mxu1 %v197_v5  ;;  %v215_v3 = vld [vmem:[#allocation2 + $0x4f0] sm:$0xff]  ;;  %v88_v4 = vld [vmem:[#allocation2 + $0xf8] sm:$0xff] }
  0x76   :  { %587 = vmatpush.msra.mxu2 %v70_v6  ;;  %613 = vmatpush.msra.mxu3 %v198_v7  ;;  %v216_v5 = vld [vmem:[#allocation2 + $0x4f8] sm:$0xff]  ;;  %v79_v6 = vld [vmem:[#allocation2 + $0xb0] sm:$0xff] }
  0x77   :  { %536 = vmatpush.msra.mxu0 %v61_v8  ;;  %562 = vmatpush.msra.mxu1 %v189_v9  ;;  %v207_v7 = vld [vmem:[#allocation2 + $0x4b0] sm:$0xff]  ;;  %v80_v8 = vld [vmem:[#allocation2 + $0xb8] sm:$0xff] }
  0x78   :  { %588 = vmatpush.msra.mxu2 %v62_v10  ;;  %614 = vmatpush.msra.mxu3 %v190_v11  ;;  %v208_v9 = vld [vmem:[#allocation2 + $0x4b8] sm:$0xff]  ;;  %v71_v10 = vld [vmem:[#allocation2 + $0x70] sm:$0xff] }
  0x79   :  { %537 = vmatmul.f32.vlgmr.msra.gmra.mxu0 %v2284_v20  ;;  %563 = vmatmul.f32.vlgmr.msra.gmra.mxu1 %v2286_v21  ;;  %v199_v11 = vld [vmem:[#allocation2 + $0x470] sm:$0xff] }
  0x7a   :  { %589 = vmatmul.f32.vlgmr.msra.gmra.mxu2 %v2284_v20  ;;  %615 = vmatmul.f32.vlgmr.msra.gmra.mxu3 %v2286_v21 }
  0x7b   :  { %625 = vmatpush.msrb.mxu0 %v183_v12  ;;  %651 = vmatpush.msrb.mxu1 %v311_v13  ;;  %v72_v12 = vld [vmem:[#allocation2 + $0x78] sm:$0xff] }
  0x7c   :  { %677 = vmatpush.msrb.mxu2 %v184_v14  ;;  %703 = vmatpush.msrb.mxu3 %v312_v15  ;;  %v200_v13 = vld [vmem:[#allocation2 + $0x478] sm:$0xff]  ;;  %v63_v14 = vld [vmem:[#allocation2 + $0x30] sm:$0xff] }
  0x7d   :  { %626 = vmatpush.msrb.mxu0 %v175_v16  ;;  %652 = vmatpush.msrb.mxu1 %v303_v17  ;;  %v191_v15 = vld [vmem:[#allocation2 + $0x430] sm:$0xff]  ;;  %v64_v16 = vld [vmem:[#allocation2 + $0x38] sm:$0xff] }
  0x7e   :  { %678 = vmatpush.msrb.mxu2 %v176_v18  ;;  %704 = vmatpush.msrb.mxu3 %v304_v19  ;;  %v192_v17 = vld [vmem:[#allocation2 + $0x438] sm:$0xff]  ;;  %v878_v18 = vld [vmem:[#allocation2 + $0xbc0] sm:$0xff] }
  0x7f   :  { %627 = vmatpush.msrb.mxu0 %v167_v22  ;;  %653 = vmatpush.msrb.mxu1 %v295_v23  ;;  %v1006_v19 = vld [vmem:[#allocation2 + $0xfc0] sm:$0xff]  ;;  %v879_v22 = vld [vmem:[#allocation2 + $0xbc8] sm:$0xff] }
  0x80   :  { %679 = vmatpush.msrb.mxu2 %v168_v24  ;;  %705 = vmatpush.msrb.mxu3 %v296_v25  ;;  %v1007_v23 = vld [vmem:[#allocation2 + $0xfc8] sm:$0xff]  ;;  %v870_v24 = vld [vmem:[#allocation2 + $0xb80] sm:$0xff] }
  0x81   :  { %628 = vmatpush.msrb.mxu0 %v159_v26  ;;  %654 = vmatpush.msrb.mxu1 %v287_v27  ;;  %v998_v25 = vld [vmem:[#allocation2 + $0xf80] sm:$0xff]  ;;  %v871_v26 = vld [vmem:[#allocation2 + $0xb88] sm:$0xff] }
  0x82   :  { %680 = vmatpush.msrb.mxu2 %v160_v28  ;;  %706 = vmatpush.msrb.mxu3 %v288_v29  ;;  %v999_v27 = vld [vmem:[#allocation2 + $0xf88] sm:$0xff]  ;;  %v862_v28 = vld [vmem:[#allocation2 + $0xb40] sm:$0xff] }
  0x83   :  { %540 = vmatmul.f32.gmra.mxu0 %v2292_v38  ;;  %566 = vmatmul.f32.gmra.mxu1 %v2294_v39  ;;  %v990_v29 = vld [vmem:[#allocation2 + $0xf40] sm:$0xff] }
  0x84   :  { %592 = vmatmul.f32.gmra.mxu2 %v2292_v38  ;;  %618 = vmatmul.f32.gmra.mxu3 %v2294_v39 }
  0x85   :  { %629 = vmatpush.msrb.mxu0 %v151_v30  ;;  %655 = vmatpush.msrb.mxu1 %v279_v31  ;;  %v863_v30 = vld [vmem:[#allocation2 + $0xb48] sm:$0xff] }
  0x86   :  { %681 = vmatpush.msrb.mxu2 %v152_v32  ;;  %707 = vmatpush.msrb.mxu3 %v280_v33  ;;  %v991_v31 = vld [vmem:[#allocation2 + $0xf48] sm:$0xff]  ;;  %v854_v32 = vld [vmem:[#allocation2 + $0xb00] sm:$0xff] }
  0x87   :  { %630 = vmatpush.msrb.mxu0 %v143_v34  ;;  %656 = vmatpush.msrb.mxu1 %v271_v35  ;;  %v983_v33 = vld [vmem:[#allocation2 + $0xf08] sm:$0xff]  ;;  %v846_v34 = vld [vmem:[#allocation2 + $0xac0] sm:$0xff] }
  0x88   :  { %682 = vmatpush.msrb.mxu2 %v144_v36  ;;  %708 = vmatpush.msrb.mxu3 %v272_v37  ;;  %v974_v35 = vld [vmem:[#allocation2 + $0xec0] sm:$0xff]  ;;  %v847_v36 = vld [vmem:[#allocation2 + $0xac8] sm:$0xff] }
  0x89   :  { %631 = vmatpush.msrb.mxu0 %v135_v40  ;;  %657 = vmatpush.msrb.mxu1 %v263_v41  ;;  %v975_v37 = vld [vmem:[#allocation2 + $0xec8] sm:$0xff]  ;;  %v838_v40 = vld [vmem:[#allocation2 + $0xa80] sm:$0xff] }
  0x8a   :  { %683 = vmatpush.msrb.mxu2 %v136_v42  ;;  %709 = vmatpush.msrb.mxu3 %v264_v43  ;;  %v966_v41 = vld [vmem:[#allocation2 + $0xe80] sm:$0xff]  ;;  %v839_v42 = vld [vmem:[#allocation2 + $0xa88] sm:$0xff] }
  0x8b   :  { %632 = vmatpush.msrb.mxu0 %v127_v44  ;;  %658 = vmatpush.msrb.mxu1 %v255_v45  ;;  %v967_v43 = vld [vmem:[#allocation2 + $0xe88] sm:$0xff]  ;;  %v830_v44 = vld [vmem:[#allocation2 + $0xa40] sm:$0xff] }
  0x8c   :  { %684 = vmatpush.msrb.mxu2 %v128_v46  ;;  %710 = vmatpush.msrb.mxu3 %v256_v47  ;;  %v958_v45 = vld [vmem:[#allocation2 + $0xe40] sm:$0xff]  ;;  %v831_v46 = vld [vmem:[#allocation2 + $0xa48] sm:$0xff] }
  0x8d   :  { %543 = vmatmul.f32.gmra.mxu0 %v2300_v56  ;;  %569 = vmatmul.f32.gmra.mxu1 %v2302_v57  ;;  %v959_v47 = vld [vmem:[#allocation2 + $0xe48] sm:$0xff] }
  0x8e   :  { %595 = vmatmul.f32.gmra.mxu2 %v2300_v56  ;;  %621 = vmatmul.f32.gmra.mxu3 %v2302_v57 }
  0x8f   :  { %633 = vmatpush.msrb.mxu0 %v119_v48  ;;  %659 = vmatpush.msrb.mxu1 %v247_v49  ;;  %v822_v48 = vld [vmem:[#allocation2 + $0xa00] sm:$0xff]  ;;  %v951_v49 = vld [vmem:[#allocation2 + $0xe08] sm:$0xff] }
  0x90   :  { %685 = vmatpush.msrb.mxu2 %v120_v50  ;;  %711 = vmatpush.msrb.mxu3 %v248_v51  ;;  %v814_v50 = vld [vmem:[#allocation2 + $0x9c0] sm:$0xff] }
  0x91   :  { %634 = vmatpush.msrb.mxu0 %v111_v52  ;;  %660 = vmatpush.msrb.mxu1 %v239_v53  ;;  %v942_v51 = vld [vmem:[#allocation2 + $0xdc0] sm:$0xff]  ;;  %v815_v52 = vld [vmem:[#allocation2 + $0x9c8] sm:$0xff] }
  0x92   :  { %686 = vmatpush.msrb.mxu2 %v112_v54  ;;  %712 = vmatpush.msrb.mxu3 %v240_v55  ;;  %v943_v53 = vld [vmem:[#allocation2 + $0xdc8] sm:$0xff]  ;;  %v806_v54 = vld [vmem:[#allocation2 + $0x980] sm:$0xff] }
  0x93   :  { %635 = vmatpush.msrb.mxu0 %v103_v58  ;;  %661 = vmatpush.msrb.mxu1 %v231_v59  ;;  %v934_v55 = vld [vmem:[#allocation2 + $0xd80] sm:$0xff]  ;;  %v807_v58 = vld [vmem:[#allocation2 + $0x988] sm:$0xff] }
  0x94   :  { %687 = vmatpush.msrb.mxu2 %v104_v60  ;;  %713 = vmatpush.msrb.mxu3 %v232_v61  ;;  %v935_v59 = vld [vmem:[#allocation2 + $0xd88] sm:$0xff]  ;;  %v798_v60 = vld [vmem:[#allocation2 + $0x940] sm:$0xff] }
  0x95   :  { %636 = vmatpush.msrb.mxu0 %v95_v62  ;;  %662 = vmatpush.msrb.mxu1 %v223_v63  ;;  %v926_v61 = vld [vmem:[#allocation2 + $0xd40] sm:$0xff]  ;;  %v799_v62 = vld [vmem:[#allocation2 + $0x948] sm:$0xff] }
  0x96   :  { %688 = vmatpush.msrb.mxu2 %v96_v0  ;;  %714 = vmatpush.msrb.mxu3 %v224_v1  ;;  %v927_v63 = vld [vmem:[#allocation2 + $0xd48] sm:$0xff]  ;;  %v790_v0 = vld [vmem:[#allocation2 + $0x900] sm:$0xff] }
  0x97   :  { %637 = vmatpush.msrb.mxu0 %v87_v2  ;;  %663 = vmatpush.msrb.mxu1 %v215_v3  ;;  %v919_v1 = vld [vmem:[#allocation2 + $0xd08] sm:$0xff] }
  0x98   :  { %689 = vmatpush.msrb.mxu2 %v88_v4  ;;  %715 = vmatpush.msrb.mxu3 %v216_v5  ;;  %v782_v4 = vld [vmem:[#allocation2 + $0x8c0] sm:$0xff] }
  0x99   :  { %638 = vmatpush.msrb.mxu0 %v79_v6  ;;  %664 = vmatpush.msrb.mxu1 %v207_v7  ;;  %v910_v5 = vld [vmem:[#allocation2 + $0xcc0] sm:$0xff] }
  0x9a   :  { %690 = vmatpush.msrb.mxu2 %v80_v8  ;;  %716 = vmatpush.msrb.mxu3 %v208_v9  ;;  %v783_v9 = vld [vmem:[#allocation2 + $0x8c8] sm:$0xff] }
  0x9b   :  { %639 = vmatpush.msrb.mxu0 %v71_v10  ;;  %665 = vmatpush.msrb.mxu1 %v199_v11  ;;  %v911_v10 = vld [vmem:[#allocation2 + $0xcc8] sm:$0xff] }
  0x9c   :  { %691 = vmatpush.msrb.mxu2 %v72_v12  ;;  %717 = vmatpush.msrb.mxu3 %v200_v13  ;;  %v774_v12 = vld [vmem:[#allocation2 + $0x880] sm:$0xff] }
  0x9d   :  { %640 = vmatpush.msrb.mxu0 %v63_v14  ;;  %666 = vmatpush.msrb.mxu1 %v191_v15  ;;  %v902_v13 = vld [vmem:[#allocation2 + $0xc80] sm:$0xff]  ;;  %v775_v14 = vld [vmem:[#allocation2 + $0x888] sm:$0xff] }
  0x9e   :  { %692 = vmatpush.msrb.mxu2 %v64_v16  ;;  %718 = vmatpush.msrb.mxu3 %v192_v17  ;;  %v903_v15 = vld [vmem:[#allocation2 + $0xc88] sm:$0xff]  ;;  %v766_v16 = vld [vmem:[#allocation2 + $0x840] sm:$0xff] }
  0x9f   :  { %641 = vmatmul.f32.vlgmr.msrb.gmra.mxu0 %v2284_v20  ;;  %667 = vmatmul.f32.vlgmr.msrb.gmra.mxu1 %v2286_v21  ;;  %v894_v17 = vld [vmem:[#allocation2 + $0xc40] sm:$0xff] }
  0xa0   :  { %693 = vmatmul.f32.vlgmr.msrb.gmra.mxu2 %v2284_v20  ;;  %719 = vmatmul.f32.vlgmr.msrb.gmra.mxu3 %v2286_v21  ;;  %v982_v20 = vld [vmem:[#allocation2 + $0xf00] sm:$0xff]  ;;  %v855_v21 = vld [vmem:[#allocation2 + $0xb08] sm:$0xff] }
  0xa1   :  { %1014 = vmatpush.msra.mxu0 %v878_v18  ;;  %1040 = vmatpush.msra.mxu1 %v1006_v19  ;;  %v767_v18 = vld [vmem:[#allocation2 + $0x848] sm:$0xff] }
  0xa2   :  { %1066 = vmatpush.msra.mxu2 %v879_v22  ;;  %1092 = vmatpush.msra.mxu3 %v1007_v23  ;;  %v895_v19 = vld [vmem:[#allocation2 + $0xc48] sm:$0xff]  ;;  %v758_v22 = vld [vmem:[#allocation2 + $0x800] sm:$0xff] }
  0xa3   :  { %1015 = vmatpush.msra.mxu0 %v870_v24  ;;  %1041 = vmatpush.msra.mxu1 %v998_v25  ;;  %v886_v23 = vld [vmem:[#allocation2 + $0xc00] sm:$0xff]  ;;  %v759_v24 = vld [vmem:[#allocation2 + $0x808] sm:$0xff] }
  0xa4   :  { %1067 = vmatpush.msra.mxu2 %v871_v26  ;;  %1093 = vmatpush.msra.mxu3 %v999_v27  ;;  %v887_v25 = vld [vmem:[#allocation2 + $0xc08] sm:$0xff]  ;;  %v880_v26 = vld [vmem:[#allocation2 + $0xbd0] sm:$0xff] }
  0xa5   :  { %1016 = vmatpush.msra.mxu0 %v862_v28  ;;  %1042 = vmatpush.msra.mxu1 %v990_v29  ;;  %v1008_v27 = vld [vmem:[#allocation2 + $0xfd0] sm:$0xff]  ;;  %v881_v28 = vld [vmem:[#allocation2 + $0xbd8] sm:$0xff] }
  0xa6   :  { %1068 = vmatpush.msra.mxu2 %v863_v30  ;;  %1094 = vmatpush.msra.mxu3 %v991_v31  ;;  %v1009_v29 = vld [vmem:[#allocation2 + $0xfd8] sm:$0xff] }
  0xa7   :  { %1017 = vmatpush.msra.mxu0 %v854_v32  ;;  %1043 = vmatpush.msra.mxu1 %v982_v20  ;;  %v872_v32 = vld [vmem:[#allocation2 + $0xb90] sm:$0xff] }
  0xa8   :  { %1069 = vmatpush.msra.mxu2 %v855_v21  ;;  %1095 = vmatpush.msra.mxu3 %v983_v33  ;;  %v1000_v20 = vld [vmem:[#allocation2 + $0xf90] sm:$0xff] }
  0xa9   :  { %644 = vmatmul.f32.gmra.mxu0 %v2292_v38  ;;  %670 = vmatmul.f32.gmra.mxu1 %v2294_v39 }
  0xaa   :  { %696 = vmatmul.f32.gmra.mxu2 %v2292_v38  ;;  %722 = vmatmul.f32.gmra.mxu3 %v2294_v39  ;;  %v950_v38 = vld [vmem:[#allocation2 + $0xe00] sm:$0xff]  ;;  %v823_v39 = vld [vmem:[#allocation2 + $0xa08] sm:$0xff] }
  0xab   :  { %1018 = vmatpush.msra.mxu0 %v846_v34  ;;  %1044 = vmatpush.msra.mxu1 %v974_v35  ;;  %v873_v35 = vld [vmem:[#allocation2 + $0xb98] sm:$0xff] }
  0xac   :  { %1070 = vmatpush.msra.mxu2 %v847_v36  ;;  %1096 = vmatpush.msra.mxu3 %v975_v37  ;;  %v1001_v36 = vld [vmem:[#allocation2 + $0xf98] sm:$0xff] }
  0xad   :  { %1019 = vmatpush.msra.mxu0 %v838_v40  ;;  %1045 = vmatpush.msra.mxu1 %v966_v41  ;;  %v864_v40 = vld [vmem:[#allocation2 + $0xb50] sm:$0xff] }
  0xae   :  { %1071 = vmatpush.msra.mxu2 %v839_v42  ;;  %1097 = vmatpush.msra.mxu3 %v967_v43  ;;  %v992_v41 = vld [vmem:[#allocation2 + $0xf50] sm:$0xff]  ;;  %v865_v42 = vld [vmem:[#allocation2 + $0xb58] sm:$0xff] }
  0xaf   :  { %1020 = vmatpush.msra.mxu0 %v830_v44  ;;  %1046 = vmatpush.msra.mxu1 %v958_v45  ;;  %v993_v43 = vld [vmem:[#allocation2 + $0xf58] sm:$0xff]  ;;  %v856_v44 = vld [vmem:[#allocation2 + $0xb10] sm:$0xff] }
  0xb0   :  { %1072 = vmatpush.msra.mxu2 %v831_v46  ;;  %1098 = vmatpush.msra.mxu3 %v959_v47  ;;  %v984_v45 = vld [vmem:[#allocation2 + $0xf10] sm:$0xff]  ;;  %v857_v46 = vld [vmem:[#allocation2 + $0xb18] sm:$0xff] }
  0xb1   :  { %1021 = vmatpush.msra.mxu0 %v822_v48  ;;  %1047 = vmatpush.msra.mxu1 %v950_v38  ;;  %v985_v47 = vld [vmem:[#allocation2 + $0xf18] sm:$0xff]  ;;  %v848_v48 = vld [vmem:[#allocation2 + $0xad0] sm:$0xff] }
  0xb2   :  { %1073 = vmatpush.msra.mxu2 %v823_v39  ;;  %1099 = vmatpush.msra.mxu3 %v951_v49  ;;  %v976_v38 = vld [vmem:[#allocation2 + $0xed0] sm:$0xff]  ;;  %v2352_v39 = vld [vmem:[#allocation5] sm:$0xff]  ;;  %v2355_v49 = vld [vmem:[#allocation5 + $0x8] sm:$0xff] }
  0xb3   :  { %647 = vmatmul.f32.gmra.mxu0 %v2300_v56  ;;  %673 = vmatmul.f32.gmra.mxu1 %v2302_v57 }
  0xb4   :  { %699 = vmatmul.f32.gmra.mxu2 %v2300_v56  ;;  %725 = vmatmul.f32.gmra.mxu3 %v2302_v57  ;;  %v918_v56 = vld [vmem:[#allocation2 + $0xd00] sm:$0xff]  ;;  %v791_v57 = vld [vmem:[#allocation2 + $0x908] sm:$0xff] }
  0xb5   :  { %1022 = vmatpush.msra.mxu0 %v814_v50  ;;  %1048 = vmatpush.msra.mxu1 %v942_v51  ;;  %v849_v50 = vld [vmem:[#allocation2 + $0xad8] sm:$0xff] }
  0xb6   :  { %1074 = vmatpush.msra.mxu2 %v815_v52  ;;  %1100 = vmatpush.msra.mxu3 %v943_v53  ;;  %v977_v51 = vld [vmem:[#allocation2 + $0xed8] sm:$0xff]  ;;  %v840_v52 = vld [vmem:[#allocation2 + $0xa90] sm:$0xff] }
  0xb7   :  { %1023 = vmatpush.msra.mxu0 %v806_v54  ;;  %1049 = vmatpush.msra.mxu1 %v934_v55  ;;  %v968_v53 = vld [vmem:[#allocation2 + $0xe90] sm:$0xff]  ;;  %v841_v54 = vld [vmem:[#allocation2 + $0xa98] sm:$0xff] }
  0xb8   :  { %1075 = vmatpush.msra.mxu2 %v807_v58  ;;  %1101 = vmatpush.msra.mxu3 %v935_v59  ;;  %v969_v55 = vld [vmem:[#allocation2 + $0xe98] sm:$0xff]  ;;  %v832_v58 = vld [vmem:[#allocation2 + $0xa50] sm:$0xff] }
  0xb9   :  { %1024 = vmatpush.msra.mxu0 %v798_v60  ;;  %1050 = vmatpush.msra.mxu1 %v926_v61  ;;  %v330_v2 = vpop.f32.mrf.mxu0  ;;  %v356_v3 = vpop.f32.mrf.mxu1  ;;  %v960_v59 = vld [vmem:[#allocation2 + $0xe50] sm:$0xff]  ;;  %v833_v60 = vld [vmem:[#allocation2 + $0xa58] sm:$0xff] }
  0xba   :  { %1076 = vmatpush.msra.mxu2 %v799_v62  ;;  %1102 = vmatpush.msra.mxu3 %v927_v63  ;;  %v2344_v6 = vadd.f32 %v356_v3, %v330_v2  ;;  %v382_v7 = vpop.f32.mrf.mxu2  ;;  %v408_v8 = vpop.f32.mrf.mxu3  ;;  %v961_v61 = vld [vmem:[#allocation2 + $0xe58] sm:$0xff]  ;;  %v824_v62 = vld [vmem:[#allocation2 + $0xa10] sm:$0xff] }
  0xbb   :  { %1025 = vmatpush.msra.mxu0 %v790_v0  ;;  %1051 = vmatpush.msra.mxu1 %v918_v56  ;;  %v2346_v11 = vadd.f32 %v408_v8, %v382_v7  ;;  %v952_v63 = vld [vmem:[#allocation2 + $0xe10] sm:$0xff]  ;;  %v825_v0 = vld [vmem:[#allocation2 + $0xa18] sm:$0xff] }
  0xbc   :  { %1077 = vmatpush.msra.mxu2 %v791_v57  ;;  %1103 = vmatpush.msra.mxu3 %v919_v1  ;;  %v953_v56 = vld [vmem:[#allocation2 + $0xe18] sm:$0xff]  ;;  %v816_v57 = vld [vmem:[#allocation2 + $0x9d0] sm:$0xff] }
  0xbd   :  { %1026 = vmatpush.msra.mxu0 %v782_v4  ;;  %1052 = vmatpush.msra.mxu1 %v910_v5  ;;  %v944_v1 = vld [vmem:[#allocation2 + $0xdd0] sm:$0xff]  ;;  %v2363_v3 = vld [vmem:[#allocation5 + $0x18] sm:$0xff] }
  0xbe   :  { %1078 = vmatpush.msra.mxu2 %v783_v9  ;;  %1104 = vmatpush.msra.mxu3 %v911_v10  ;;  %v2360_v2 = vld [vmem:[#allocation5 + $0x10] sm:$0xff]  ;;  %v817_v4 = vld [vmem:[#allocation2 + $0x9d8] sm:$0xff] }
  0xbf   :  { %1027 = vmatpush.msra.mxu0 %v774_v12  ;;  %1053 = vmatpush.msra.mxu1 %v902_v13  ;;  %v945_v5 = vld [vmem:[#allocation2 + $0xdd8] sm:$0xff]  ;;  %v808_v7 = vld [vmem:[#allocation2 + $0x990] sm:$0xff] }
  0xc0   :  { %1079 = vmatpush.msra.mxu2 %v775_v14  ;;  %1105 = vmatpush.msra.mxu3 %v903_v15  ;;  %v936_v8 = vld [vmem:[#allocation2 + $0xd90] sm:$0xff]  ;;  %v809_v9 = vld [vmem:[#allocation2 + $0x998] sm:$0xff] }
  0xc1   :  { %1028 = vmatpush.msra.mxu0 %v766_v16  ;;  %1054 = vmatpush.msra.mxu1 %v894_v17  ;;  %v937_v10 = vld [vmem:[#allocation2 + $0xd98] sm:$0xff]  ;;  %v800_v14 = vld [vmem:[#allocation2 + $0x950] sm:$0xff] }
  0xc2   :  { %1080 = vmatpush.msra.mxu2 %v767_v18  ;;  %1106 = vmatpush.msra.mxu3 %v895_v19  ;;  %v928_v15 = vld [vmem:[#allocation2 + $0xd50] sm:$0xff]  ;;  %v801_v16 = vld [vmem:[#allocation2 + $0x958] sm:$0xff] }
  0xc3   :  { %1029 = vmatpush.msra.mxu0 %v758_v22  ;;  %1055 = vmatpush.msra.mxu1 %v886_v23  ;;  %v333_v30 = vpop.f32.mrf.mxu0  ;;  %v359_v31 = vpop.f32.mrf.mxu1  ;;  %v929_v17 = vld [vmem:[#allocation2 + $0xd58] sm:$0xff]  ;;  %v792_v18 = vld [vmem:[#allocation2 + $0x910] sm:$0xff] }
  0xc4   :  { %1081 = vmatpush.msra.mxu2 %v759_v24  ;;  %1107 = vmatpush.msra.mxu3 %v887_v25  ;;  %v2348_v21 = vadd.f32 %v359_v31, %v333_v30  ;;  %v385_v33 = vpop.f32.mrf.mxu2  ;;  %v411_v34 = vpop.f32.mrf.mxu3  ;;  %v920_v19 = vld [vmem:[#allocation2 + $0xd10] sm:$0xff]  ;;  %v793_v22 = vld [vmem:[#allocation2 + $0x918] sm:$0xff] }
  0xc5   :  { %1118 = vmatpush.msrb.mxu0 %v880_v26  ;;  %1144 = vmatpush.msrb.mxu1 %v1008_v27  ;;  %v2350_v37 = vadd.f32 %v411_v34, %v385_v33  ;;  %v921_v23 = vld [vmem:[#allocation2 + $0xd18] sm:$0xff]  ;;  %v784_v24 = vld [vmem:[#allocation2 + $0x8d0] sm:$0xff]  ;;  %v2372_v26 = vld [vmem:[#allocation5 + $0x20] sm:$0xff] }
  0xc6   :  { %3006 = vst [vmem:[#allocation11_spill] sm:$0xff] %v2348_v21  ;;  %1170 = vmatpush.msrb.mxu2 %v881_v28  ;;  %1196 = vmatpush.msrb.mxu3 %v1009_v29  ;;  %v912_v25 = vld [vmem:[#allocation2 + $0xcd0] sm:$0xff]  ;;  %v2375_v27 = vld [vmem:[#allocation5 + $0x28] sm:$0xff]  ;;  %v785_v28 = vld [vmem:[#allocation2 + $0x8d8] sm:$0xff] }
  0xc7   :  { %3007 = vst [vmem:[#allocation12_spill] sm:$0xff] %v2350_v37  ;;  %1119 = vmatpush.msrb.mxu0 %v872_v32  ;;  %1145 = vmatpush.msrb.mxu1 %v1000_v20  ;;  %v913_v29 = vld [vmem:[#allocation2 + $0xcd8] sm:$0xff]  ;;  %v776_v32 = vld [vmem:[#allocation2 + $0x890] sm:$0xff] }
  0xc8   :  { %1171 = vmatpush.msrb.mxu2 %v873_v35  ;;  %1197 = vmatpush.msrb.mxu3 %v1001_v36  ;;  %v904_v20 = vld [vmem:[#allocation2 + $0xc90] sm:$0xff]  ;;  %v777_v33 = vld [vmem:[#allocation2 + $0x898] sm:$0xff] }
  0xc9   :  { %1120 = vmatpush.msrb.mxu0 %v864_v40  ;;  %1146 = vmatpush.msrb.mxu1 %v992_v41  ;;  %v905_v34 = vld [vmem:[#allocation2 + $0xc98] sm:$0xff]  ;;  %v768_v40 = vld [vmem:[#allocation2 + $0x850] sm:$0xff] }
  0xca   :  { %1172 = vmatpush.msrb.mxu2 %v865_v42  ;;  %1198 = vmatpush.msrb.mxu3 %v993_v43  ;;  %v896_v41 = vld [vmem:[#allocation2 + $0xc50] sm:$0xff]  ;;  %v769_v42 = vld [vmem:[#allocation2 + $0x858] sm:$0xff] }
  0xcb   :  { %1121 = vmatpush.msrb.mxu0 %v856_v44  ;;  %1147 = vmatpush.msrb.mxu1 %v984_v45  ;;  %v897_v43 = vld [vmem:[#allocation2 + $0xc58] sm:$0xff]  ;;  %v760_v44 = vld [vmem:[#allocation2 + $0x810] sm:$0xff] }
  0xcc   :  { %1173 = vmatpush.msrb.mxu2 %v857_v46  ;;  %1199 = vmatpush.msrb.mxu3 %v985_v47  ;;  %v888_v45 = vld [vmem:[#allocation2 + $0xc10] sm:$0xff]  ;;  %v761_v46 = vld [vmem:[#allocation2 + $0x818] sm:$0xff] }
  0xcd   :  { %1030 = vmatmul.f32.vlgmr.msra.gmra.mxu0 %v2352_v39  ;;  %1056 = vmatmul.f32.vlgmr.msra.gmra.mxu1 %v2355_v49  ;;  %v2368_v12 = vpop.f32.mrf.mxu0  ;;  %v2370_v13 = vpop.f32.mrf.mxu1  ;;  %v889_v47 = vld [vmem:[#allocation2 + $0xc18] sm:$0xff] }
  0xce   :  { %1082 = vmatmul.f32.vlgmr.msra.gmra.mxu2 %v2352_v39  ;;  %1108 = vmatmul.f32.vlgmr.msra.gmra.mxu3 %v2355_v49  ;;  %v2378_v30 = vpop.f32.mrf.mxu2  ;;  %v2380_v31 = vpop.f32.mrf.mxu3 }
  0xcf   :  { %1122 = vmatpush.msrb.mxu0 %v848_v48  ;;  %1148 = vmatpush.msrb.mxu1 %v976_v38  ;;  %v882_v48 = vld [vmem:[#allocation2 + $0xbe0] sm:$0xff] }
  0xd0   :  { %1174 = vmatpush.msrb.mxu2 %v849_v50  ;;  %1200 = vmatpush.msrb.mxu3 %v977_v51  ;;  %v1010_v38 = vld [vmem:[#allocation2 + $0xfe0] sm:$0xff]  ;;  %v883_v50 = vld [vmem:[#allocation2 + $0xbe8] sm:$0xff] }
  0xd1   :  { %1123 = vmatpush.msrb.mxu0 %v840_v52  ;;  %1149 = vmatpush.msrb.mxu1 %v968_v53  ;;  %v1011_v51 = vld [vmem:[#allocation2 + $0xfe8] sm:$0xff] }
  0xd2   :  { %1175 = vmatpush.msrb.mxu2 %v841_v54  ;;  %1201 = vmatpush.msrb.mxu3 %v969_v55  ;;  %v874_v54 = vld [vmem:[#allocation2 + $0xba0] sm:$0xff] }
  0xd3   :  { %1124 = vmatpush.msrb.mxu0 %v832_v58  ;;  %1150 = vmatpush.msrb.mxu1 %v960_v59  ;;  %v1002_v55 = vld [vmem:[#allocation2 + $0xfa0] sm:$0xff]  ;;  %v875_v58 = vld [vmem:[#allocation2 + $0xba8] sm:$0xff] }
  0xd4   :  { %1176 = vmatpush.msrb.mxu2 %v833_v60  ;;  %1202 = vmatpush.msrb.mxu3 %v961_v61  ;;  %v1003_v59 = vld [vmem:[#allocation2 + $0xfa8] sm:$0xff] }
  0xd5   :  { %1125 = vmatpush.msrb.mxu0 %v824_v62  ;;  %1151 = vmatpush.msrb.mxu1 %v952_v63  ;;  %v866_v62 = vld [vmem:[#allocation2 + $0xb60] sm:$0xff] }
  0xd6   :  { %1177 = vmatpush.msrb.mxu2 %v825_v0  ;;  %1203 = vmatpush.msrb.mxu3 %v953_v56  ;;  %v994_v63 = vld [vmem:[#allocation2 + $0xf60] sm:$0xff]  ;;  %v867_v0 = vld [vmem:[#allocation2 + $0xb68] sm:$0xff] }
  0xd7   :  { %1033 = vmatmul.f32.gmra.mxu0 %v2360_v2  ;;  %1059 = vmatmul.f32.gmra.mxu1 %v2363_v3  ;;  %v2384_v35 = vpop.f32.mrf.mxu0  ;;  %v2386_v36 = vpop.f32.mrf.mxu1  ;;  %v995_v56 = vld [vmem:[#allocation2 + $0xf68] sm:$0xff] }
  0xd8   :  { %1085 = vmatmul.f32.gmra.mxu2 %v2360_v2  ;;  %1111 = vmatmul.f32.gmra.mxu3 %v2363_v3  ;;  %v2390_v52 = vpop.f32.mrf.mxu2  ;;  %v2392_v53 = vpop.f32.mrf.mxu3 }
  0xd9   :  { %1126 = vmatpush.msrb.mxu0 %v816_v57  ;;  %1152 = vmatpush.msrb.mxu1 %v944_v1  ;;  %v858_v57 = vld [vmem:[#allocation2 + $0xb20] sm:$0xff] }
  0xda   :  { %1178 = vmatpush.msrb.mxu2 %v817_v4  ;;  %1204 = vmatpush.msrb.mxu3 %v945_v5  ;;  %v986_v1 = vld [vmem:[#allocation2 + $0xf20] sm:$0xff]  ;;  %v859_v4 = vld [vmem:[#allocation2 + $0xb28] sm:$0xff] }
  0xdb   :  { %1127 = vmatpush.msrb.mxu0 %v808_v7  ;;  %1153 = vmatpush.msrb.mxu1 %v936_v8  ;;  %v987_v5 = vld [vmem:[#allocation2 + $0xf28] sm:$0xff] }
  0xdc   :  { %1179 = vmatpush.msrb.mxu2 %v809_v9  ;;  %1205 = vmatpush.msrb.mxu3 %v937_v10  ;;  %v850_v9 = vld [vmem:[#allocation2 + $0xae0] sm:$0xff] }
  0xdd   :  { %1128 = vmatpush.msrb.mxu0 %v800_v14  ;;  %1154 = vmatpush.msrb.mxu1 %v928_v15  ;;  %v978_v10 = vld [vmem:[#allocation2 + $0xee0] sm:$0xff]  ;;  %v851_v14 = vld [vmem:[#allocation2 + $0xae8] sm:$0xff] }
  0xde   :  { %1180 = vmatpush.msrb.mxu2 %v801_v16  ;;  %1206 = vmatpush.msrb.mxu3 %v929_v17  ;;  %v979_v15 = vld [vmem:[#allocation2 + $0xee8] sm:$0xff]  ;;  %v842_v16 = vld [vmem:[#allocation2 + $0xaa0] sm:$0xff] }
  0xdf   :  { %1129 = vmatpush.msrb.mxu0 %v792_v18  ;;  %1155 = vmatpush.msrb.mxu1 %v920_v19  ;;  %v970_v17 = vld [vmem:[#allocation2 + $0xea0] sm:$0xff]  ;;  %v843_v18 = vld [vmem:[#allocation2 + $0xaa8] sm:$0xff] }
  0xe0   :  { %1181 = vmatpush.msrb.mxu2 %v793_v22  ;;  %1207 = vmatpush.msrb.mxu3 %v921_v23  ;;  %v971_v19 = vld [vmem:[#allocation2 + $0xea8] sm:$0xff] }
  0xe1   :  { %1036 = vmatmul.f32.gmra.mxu0 %v2372_v26  ;;  %1062 = vmatmul.f32.gmra.mxu1 %v2375_v27 }
  0xe2   :  { %1088 = vmatmul.f32.gmra.mxu2 %v2372_v26  ;;  %1114 = vmatmul.f32.gmra.mxu3 %v2375_v27  ;;  %v2396_v60 = vpop.f32.mrf.mxu0  ;;  %v2398_v61 = vpop.f32.mrf.mxu1 }
  0xe3   :  { %1130 = vmatpush.msrb.mxu0 %v784_v24  ;;  %1156 = vmatpush.msrb.mxu1 %v912_v25  ;;  %v834_v24 = vld [vmem:[#allocation2 + $0xa60] sm:$0xff] }
  0xe4   :  { %1182 = vmatpush.msrb.mxu2 %v785_v28  ;;  %1208 = vmatpush.msrb.mxu3 %v913_v29  ;;  %v962_v25 = vld [vmem:[#allocation2 + $0xe60] sm:$0xff]  ;;  %v835_v28 = vld [vmem:[#allocation2 + $0xa68] sm:$0xff] }
  0xe5   :  { %1131 = vmatpush.msrb.mxu0 %v776_v32  ;;  %1157 = vmatpush.msrb.mxu1 %v904_v20  ;;  %v963_v29 = vld [vmem:[#allocation2 + $0xe68] sm:$0xff]  ;;  %v826_v32 = vld [vmem:[#allocation2 + $0xa20] sm:$0xff] }
  0xe6   :  { %1183 = vmatpush.msrb.mxu2 %v777_v33  ;;  %1209 = vmatpush.msrb.mxu3 %v905_v34  ;;  %v954_v20 = vld [vmem:[#allocation2 + $0xe20] sm:$0xff]  ;;  %v827_v33 = vld [vmem:[#allocation2 + $0xa28] sm:$0xff] }
  0xe7   :  { %1132 = vmatpush.msrb.mxu0 %v768_v40  ;;  %1158 = vmatpush.msrb.mxu1 %v896_v41  ;;  %v955_v34 = vld [vmem:[#allocation2 + $0xe28] sm:$0xff] }
  0xe8   :  { %1184 = vmatpush.msrb.mxu2 %v769_v42  ;;  %1210 = vmatpush.msrb.mxu3 %v897_v43  ;;  %v818_v42 = vld [vmem:[#allocation2 + $0x9e0] sm:$0xff] }
  0xe9   :  { %1133 = vmatpush.msrb.mxu0 %v760_v44  ;;  %1159 = vmatpush.msrb.mxu1 %v888_v45  ;;  %v2400_v7 = vpop.f32.mrf.mxu2  ;;  %v2402_v8 = vpop.f32.mrf.mxu3  ;;  %v946_v43 = vld [vmem:[#allocation2 + $0xde0] sm:$0xff]  ;;  %v819_v44 = vld [vmem:[#allocation2 + $0x9e8] sm:$0xff] }
  0xea   :  { %1185 = vmatpush.msrb.mxu2 %v761_v46  ;;  %1211 = vmatpush.msrb.mxu3 %v889_v47  ;;  %v947_v45 = vld [vmem:[#allocation2 + $0xde8] sm:$0xff]  ;;  %v810_v46 = vld [vmem:[#allocation2 + $0x9a0] sm:$0xff] }
  0xeb   :  { %1134 = vmatmul.f32.vlgmr.msrb.gmra.mxu0 %v2352_v39  ;;  %1160 = vmatmul.f32.vlgmr.msrb.gmra.mxu1 %v2355_v49  ;;  %v938_v47 = vld [vmem:[#allocation2 + $0xda0] sm:$0xff] }
  0xec   :  { %1186 = vmatmul.f32.vlgmr.msrb.gmra.mxu2 %v2352_v39  ;;  %1212 = vmatmul.f32.vlgmr.msrb.gmra.mxu3 %v2355_v49  ;;  %v2408_v22 = vpop.f32.mrf.mxu0  ;;  %v2410_v23 = vpop.f32.mrf.mxu1 }
  0xed   :  { %1222 = vmatpush.msra.mxu0 %v882_v48  ;;  %1248 = vmatpush.msra.mxu1 %v1010_v38  ;;  %v811_v48 = vld [vmem:[#allocation2 + $0x9a8] sm:$0xff] }
  0xee   :  { %1274 = vmatpush.msra.mxu2 %v883_v50  ;;  %1300 = vmatpush.msra.mxu3 %v1011_v51  ;;  %v939_v38 = vld [vmem:[#allocation2 + $0xda8] sm:$0xff] }
  0xef   :  { %1223 = vmatpush.msra.mxu0 %v874_v54  ;;  %1249 = vmatpush.msra.mxu1 %v1002_v55  ;;  %v802_v54 = vld [vmem:[#allocation2 + $0x960] sm:$0xff] }
  0xf0   :  { %1275 = vmatpush.msra.mxu2 %v875_v58  ;;  %1301 = vmatpush.msra.mxu3 %v1003_v59  ;;  %v930_v55 = vld [vmem:[#allocation2 + $0xd60] sm:$0xff]  ;;  %v803_v58 = vld [vmem:[#allocation2 + $0x968] sm:$0xff] }
  0xf1   :  { %1224 = vmatpush.msra.mxu0 %v866_v62  ;;  %1250 = vmatpush.msra.mxu1 %v994_v63  ;;  %v931_v59 = vld [vmem:[#allocation2 + $0xd68] sm:$0xff]  ;;  %v794_v62 = vld [vmem:[#allocation2 + $0x920] sm:$0xff] }
  0xf2   :  { %1276 = vmatpush.msra.mxu2 %v867_v0  ;;  %1302 = vmatpush.msra.mxu3 %v995_v56  ;;  %v922_v63 = vld [vmem:[#allocation2 + $0xd20] sm:$0xff]  ;;  %v795_v0 = vld [vmem:[#allocation2 + $0x928] sm:$0xff] }
  0xf3   :  { %1225 = vmatpush.msra.mxu0 %v858_v57  ;;  %1251 = vmatpush.msra.mxu1 %v986_v1  ;;  %v2412_v40 = vpop.f32.mrf.mxu2  ;;  %v2414_v41 = vpop.f32.mrf.mxu3  ;;  %v923_v56 = vld [vmem:[#allocation2 + $0xd28] sm:$0xff]  ;;  %v786_v57 = vld [vmem:[#allocation2 + $0x8e0] sm:$0xff] }
  0xf4   :  { %1277 = vmatpush.msra.mxu2 %v859_v4  ;;  %1303 = vmatpush.msra.mxu3 %v987_v5  ;;  %v914_v1 = vld [vmem:[#allocation2 + $0xce0] sm:$0xff]  ;;  %v787_v4 = vld [vmem:[#allocation2 + $0x8e8] sm:$0xff] }
  0xf5   :  { %1137 = vmatmul.f32.gmra.mxu0 %v2360_v2  ;;  %1163 = vmatmul.f32.gmra.mxu1 %v2363_v3  ;;  %v915_v5 = vld [vmem:[#allocation2 + $0xce8] sm:$0xff] }
  0xf6   :  { %1189 = vmatmul.f32.gmra.mxu2 %v2360_v2  ;;  %1215 = vmatmul.f32.gmra.mxu3 %v2363_v3  ;;  %v2420_v50 = vpop.f32.mrf.mxu0  ;;  %v2422_v51 = vpop.f32.mrf.mxu1 }
  0xf7   :  { %1226 = vmatpush.msra.mxu0 %v850_v9  ;;  %1252 = vmatpush.msra.mxu1 %v978_v10 }
  0xf8   :  { %1278 = vmatpush.msra.mxu2 %v851_v14  ;;  %1304 = vmatpush.msra.mxu3 %v979_v15  ;;  %v778_v14 = vld [vmem:[#allocation2 + $0x8a0] sm:$0xff] }
  0xf9   :  { %1227 = vmatpush.msra.mxu0 %v842_v16  ;;  %1253 = vmatpush.msra.mxu1 %v970_v17  ;;  %v906_v15 = vld [vmem:[#allocation2 + $0xca0] sm:$0xff]  ;;  %v779_v16 = vld [vmem:[#allocation2 + $0x8a8] sm:$0xff] }
  0xfa   :  { %1279 = vmatpush.msra.mxu2 %v843_v18  ;;  %1305 = vmatpush.msra.mxu3 %v971_v19  ;;  %v907_v17 = vld [vmem:[#allocation2 + $0xca8] sm:$0xff]  ;;  %v770_v18 = vld [vmem:[#allocation2 + $0x860] sm:$0xff] }
  0xfb   :  { %1228 = vmatpush.msra.mxu0 %v834_v24  ;;  %1254 = vmatpush.msra.mxu1 %v962_v25  ;;  %v898_v19 = vld [vmem:[#allocation2 + $0xc60] sm:$0xff]  ;;  %v771_v24 = vld [vmem:[#allocation2 + $0x868] sm:$0xff] }
  0xfc   :  { %1280 = vmatpush.msra.mxu2 %v835_v28  ;;  %1306 = vmatpush.msra.mxu3 %v963_v29  ;;  %v899_v25 = vld [vmem:[#allocation2 + $0xc68] sm:$0xff] }
  0xfd   :  { %1229 = vmatpush.msra.mxu0 %v826_v32  ;;  %1255 = vmatpush.msra.mxu1 %v954_v20  ;;  %v2424_v9 = vpop.f32.mrf.mxu2  ;;  %v2426_v10 = vpop.f32.mrf.mxu3  ;;  %v762_v32 = vld [vmem:[#allocation2 + $0x820] sm:$0xff] }
  0xfe   :  { %1281 = vmatpush.msra.mxu2 %v827_v33  ;;  %1307 = vmatpush.msra.mxu3 %v955_v34  ;;  %v890_v20 = vld [vmem:[#allocation2 + $0xc20] sm:$0xff]  ;;  %v763_v33 = vld [vmem:[#allocation2 + $0x828] sm:$0xff] }
  0xff   :  { %1140 = vmatmul.f32.gmra.mxu0 %v2372_v26  ;;  %1166 = vmatmul.f32.gmra.mxu1 %v2375_v27  ;;  %v891_v34 = vld [vmem:[#allocation2 + $0xc28] sm:$0xff] }
 0x100   :  { %1192 = vmatmul.f32.gmra.mxu2 %v2372_v26  ;;  %1218 = vmatmul.f32.gmra.mxu3 %v2375_v27  ;;  %v2428_v28 = vpop.f32.mrf.mxu0  ;;  %v2430_v29 = vpop.f32.mrf.mxu1 }
 0x101   :  { %1230 = vmatpush.msra.mxu0 %v818_v42  ;;  %1256 = vmatpush.msra.mxu1 %v946_v43  ;;  %v884_v42 = vld [vmem:[#allocation2 + $0xbf0] sm:$0xff] }
 0x102   :  { %1282 = vmatpush.msra.mxu2 %v819_v44  ;;  %1308 = vmatpush.msra.mxu3 %v947_v45  ;;  %v1012_v43 = vld [vmem:[#allocation2 + $0xff0] sm:$0xff]  ;;  %v885_v44 = vld [vmem:[#allocation2 + $0xbf8] sm:$0xff] }
 0x103   :  { %1231 = vmatpush.msra.mxu0 %v810_v46  ;;  %1257 = vmatpush.msra.mxu1 %v938_v47  ;;  %v1013_v45 = vld [vmem:[#allocation2 + $0xff8] sm:$0xff] }
 0x104   :  { %1283 = vmatpush.msra.mxu2 %v811_v48  ;;  %1309 = vmatpush.msra.mxu3 %v939_v38  ;;  %v876_v48 = vld [vmem:[#allocation2 + $0xbb0] sm:$0xff] }
 0x105   :  { %1232 = vmatpush.msra.mxu0 %v802_v54  ;;  %1258 = vmatpush.msra.mxu1 %v930_v55  ;;  %v1004_v38 = vld [vmem:[#allocation2 + $0xfb0] sm:$0xff]  ;;  %v877_v54 = vld [vmem:[#allocation2 + $0xbb8] sm:$0xff] }
 0x106   :  { %1284 = vmatpush.msra.mxu2 %v803_v58  ;;  %1310 = vmatpush.msra.mxu3 %v931_v59  ;;  %v1005_v55 = vld [vmem:[#allocation2 + $0xfb8] sm:$0xff]  ;;  %v868_v58 = vld [vmem:[#allocation2 + $0xb70] sm:$0xff] }
 0x107   :  { %1233 = vmatpush.msra.mxu0 %v794_v62  ;;  %1259 = vmatpush.msra.mxu1 %v922_v63  ;;  %v2434_v46 = vpop.f32.mrf.mxu2  ;;  %v2436_v47 = vpop.f32.mrf.mxu3  ;;  %v996_v59 = vld [vmem:[#allocation2 + $0xf70] sm:$0xff]  ;;  %v869_v62 = vld [vmem:[#allocation2 + $0xb78] sm:$0xff] }
 0x108   :  { %1285 = vmatpush.msra.mxu2 %v795_v0  ;;  %1311 = vmatpush.msra.mxu3 %v923_v56  ;;  %v997_v63 = vld [vmem:[#allocation2 + $0xf78] sm:$0xff] }
 0x109   :  { %1234 = vmatpush.msra.mxu0 %v786_v57  ;;  %1260 = vmatpush.msra.mxu1 %v914_v1  ;;  %v860_v57 = vld [vmem:[#allocation2 + $0xb30] sm:$0xff] }
 0x10a   :  { %1286 = vmatpush.msra.mxu2 %v787_v4  ;;  %1312 = vmatpush.msra.mxu3 %v915_v5  ;;  %v2440_v0 = vpop.f32.mrf.mxu0  ;;  %v2442_v56 = vpop.f32.mrf.mxu1  ;;  %v988_v1 = vld [vmem:[#allocation2 + $0xf30] sm:$0xff]  ;;  %v861_v4 = vld [vmem:[#allocation2 + $0xb38] sm:$0xff] }
 0x10b   :  { %1235 = vmatpush.msra.mxu0 %v778_v14  ;;  %1261 = vmatpush.msra.mxu1 %v906_v15  ;;  %v989_v5 = vld [vmem:[#allocation2 + $0xf38] sm:$0xff]  ;;  %v852_v14 = vld [vmem:[#allocation2 + $0xaf0] sm:$0xff] }
 0x10c   :  { %1287 = vmatpush.msra.mxu2 %v779_v16  ;;  %1313 = vmatpush.msra.mxu3 %v907_v17  ;;  %v980_v15 = vld [vmem:[#allocation2 + $0xef0] sm:$0xff]  ;;  %v853_v16 = vld [vmem:[#allocation2 + $0xaf8] sm:$0xff] }
 0x10d   :  { %1236 = vmatpush.msra.mxu0 %v770_v18  ;;  %1262 = vmatpush.msra.mxu1 %v898_v19  ;;  %v981_v17 = vld [vmem:[#allocation2 + $0xef8] sm:$0xff] }
 0x10e   :  { %1288 = vmatpush.msra.mxu2 %v771_v24  ;;  %1314 = vmatpush.msra.mxu3 %v899_v25  ;;  %v844_v24 = vld [vmem:[#allocation2 + $0xab0] sm:$0xff] }
 0x10f   :  { %1237 = vmatpush.msra.mxu0 %v762_v32  ;;  %1263 = vmatpush.msra.mxu1 %v890_v20  ;;  %v972_v25 = vld [vmem:[#allocation2 + $0xeb0] sm:$0xff]  ;;  %v845_v32 = vld [vmem:[#allocation2 + $0xab8] sm:$0xff] }
 0x110   :  { %1289 = vmatpush.msra.mxu2 %v763_v33  ;;  %1315 = vmatpush.msra.mxu3 %v891_v34  ;;  %v973_v20 = vld [vmem:[#allocation2 + $0xeb8] sm:$0xff] }
 0x111   :  { %1238 = vmatmul.f32.vlgmr.msra.gmra.mxu0 %v2352_v39  ;;  %1264 = vmatmul.f32.vlgmr.msra.gmra.mxu1 %v2355_v49  ;;  %v2446_v18 = vpop.f32.mrf.mxu2  ;;  %v2448_v19 = vpop.f32.mrf.mxu3 }
 0x112   :  { %1290 = vmatmul.f32.vlgmr.msra.gmra.mxu2 %v2352_v39  ;;  %1316 = vmatmul.f32.vlgmr.msra.gmra.mxu3 %v2355_v49 }
 0x113   :  { %1326 = vmatpush.msrb.mxu0 %v884_v42  ;;  %1352 = vmatpush.msrb.mxu1 %v1012_v43  ;;  %v836_v42 = vld [vmem:[#allocation2 + $0xa70] sm:$0xff] }
 0x114   :  { %1378 = vmatpush.msrb.mxu2 %v885_v44  ;;  %1404 = vmatpush.msrb.mxu3 %v1013_v45  ;;  %v964_v43 = vld [vmem:[#allocation2 + $0xe70] sm:$0xff]  ;;  %v837_v44 = vld [vmem:[#allocation2 + $0xa78] sm:$0xff] }
 0x115   :  { %1327 = vmatpush.msrb.mxu0 %v876_v48  ;;  %1353 = vmatpush.msrb.mxu1 %v1004_v38  ;;  %v965_v45 = vld [vmem:[#allocation2 + $0xe78] sm:$0xff]  ;;  %v828_v48 = vld [vmem:[#allocation2 + $0xa30] sm:$0xff] }
 0x116   :  { %1379 = vmatpush.msrb.mxu2 %v877_v54  ;;  %1405 = vmatpush.msrb.mxu3 %v1005_v55  ;;  %v956_v38 = vld [vmem:[#allocation2 + $0xe30] sm:$0xff]  ;;  %v829_v54 = vld [vmem:[#allocation2 + $0xa38] sm:$0xff] }
 0x117   :  { %1328 = vmatpush.msrb.mxu0 %v868_v58  ;;  %1354 = vmatpush.msrb.mxu1 %v996_v59  ;;  %v957_v55 = vld [vmem:[#allocation2 + $0xe38] sm:$0xff] }
 0x118   :  { %1380 = vmatpush.msrb.mxu2 %v869_v62  ;;  %1406 = vmatpush.msrb.mxu3 %v997_v63  ;;  %v820_v62 = vld [vmem:[#allocation2 + $0x9f0] sm:$0xff] }
 0x119   :  { %1329 = vmatpush.msrb.mxu0 %v860_v57  ;;  %1355 = vmatpush.msrb.mxu1 %v988_v1  ;;  %v948_v63 = vld [vmem:[#allocation2 + $0xdf0] sm:$0xff]  ;;  %v2462_v57 = vadd.f32 %v2386_v36, %v2384_v35  ;;  %v821_v1 = vld [vmem:[#allocation2 + $0x9f8] sm:$0xff] }
 0x11a   :  { %1381 = vmatpush.msrb.mxu2 %v861_v4  ;;  %1407 = vmatpush.msrb.mxu3 %v989_v5  ;;  %v949_v4 = vld [vmem:[#allocation2 + $0xdf8] sm:$0xff]  ;;  %v1485_v5 = vadd.f32 %v2346_v11, %v2344_v6  ;;  %v812_v35 = vld [vmem:[#allocation2 + $0x9b0] sm:$0xff] }
 0x11b   :  { %1241 = vmatmul.f32.gmra.mxu0 %v2360_v2  ;;  %1267 = vmatmul.f32.gmra.mxu1 %v2363_v3  ;;  %v940_v36 = vld [vmem:[#allocation2 + $0xdb0] sm:$0xff] }
 0x11c   :  { %1293 = vmatmul.f32.gmra.mxu2 %v2360_v2  ;;  %1319 = vmatmul.f32.gmra.mxu3 %v2363_v3  ;;  %v2452_v33 = vpop.f32.mrf.mxu0  ;;  %v2454_v34 = vpop.f32.mrf.mxu1 }
 0x11d   :  { %1330 = vmatpush.msrb.mxu0 %v852_v14  ;;  %1356 = vmatpush.msrb.mxu1 %v980_v15  ;;  %v2470_v14 = vadd.f32 %v2370_v13, %v2368_v12  ;;  %v2474_v15 = vadd.f32 %v2380_v31, %v2378_v30  ;;  %v804_v12 = vld [vmem:[#allocation2 + $0x970] sm:$0xff]  ;;  %v2484_v30 = vadd.f32 %v2392_v53, %v2390_v52  ;;  %v805_v31 = vld [vmem:[#allocation2 + $0x978] sm:$0xff] }
 0x11e   :  { %1382 = vmatpush.msrb.mxu2 %v853_v16  ;;  %1408 = vmatpush.msrb.mxu3 %v981_v17  ;;  %v813_v16 = vld [vmem:[#allocation2 + $0x9b8] sm:$0xff]  ;;  %v932_v13 = vld [vmem:[#allocation2 + $0xd70] sm:$0xff]  ;;  %v2495_v52 = vadd.f32 %v2422_v51, %v2420_v50 }
 0x11f   :  { %1331 = vmatpush.msrb.mxu0 %v844_v24  ;;  %1357 = vmatpush.msrb.mxu1 %v972_v25  ;;  %v941_v17 = vld [vmem:[#allocation2 + $0xdb8] sm:$0xff] }
 0x120   :  { %1383 = vmatpush.msrb.mxu2 %v845_v32  ;;  %1409 = vmatpush.msrb.mxu3 %v973_v20  ;;  %v933_v32 = vld [vmem:[#allocation2 + $0xd78] sm:$0xff]  ;;  %v1486_v20 = vadd.f32 %v1485_v5, %v2462_v57 }
 0x121   :  { %1332 = vmatpush.msrb.mxu0 %v836_v42  ;;  %1358 = vmatpush.msrb.mxu1 %v964_v43  ;;  %v2489_v42 = vadd.f32 %v2410_v23, %v2408_v22  ;;  %v796_v43 = vld [vmem:[#allocation2 + $0x930] sm:$0xff]  ;;  %v797_v53 = vld [vmem:[#allocation2 + $0x938] sm:$0xff] }
 0x122   :  { %1384 = vmatpush.msrb.mxu2 %v837_v44  ;;  %1410 = vmatpush.msrb.mxu3 %v965_v45  ;;  %v924_v44 = vld [vmem:[#allocation2 + $0xd30] sm:$0xff]  ;;  %v1503_v45 = vadd.f32 %v2474_v15, %v2470_v14  ;;  %v789_v50 = vld [vmem:[#allocation2 + $0x8f8] sm:$0xff] }
 0x123   :  { %1333 = vmatpush.msrb.mxu0 %v828_v48  ;;  %1359 = vmatpush.msrb.mxu1 %v956_v38  ;;  %v2456_v58 = vpop.f32.mrf.mxu2  ;;  %v2458_v59 = vpop.f32.mrf.mxu3  ;;  %3008 = vst [vmem:[#allocation13_spill] sm:$0xff] %v2489_v42  ;;  %v925_v48 = vld [vmem:[#allocation2 + $0xd38] sm:$0xff]  ;;  %v2499_v38 = vadd.f32 %v2398_v61, %v2396_v60  ;;  %v788_v22 = vld [vmem:[#allocation2 + $0x8f0] sm:$0xff]  ;;  %v1494_v60 = vadd.f32 %v2350_v37, %v2348_v21 }
 0x124   :  { %1385 = vmatpush.msrb.mxu2 %v829_v54  ;;  %1411 = vmatpush.msrb.mxu3 %v957_v55  ;;  %v916_v23 = vld [vmem:[#allocation2 + $0xcf0] sm:$0xff]  ;;  %v2503_v54 = vadd.f32 %v2426_v10, %v2424_v9  ;;  %v917_v51 = vld [vmem:[#allocation2 + $0xcf8] sm:$0xff]  ;;  %v2514_v61 = vadd.f32 %v2414_v41, %v2412_v40  ;;  %v2524_v40 = vadd.f32 %v2402_v8, %v2400_v7 }
 0x125   :  { %1244 = vmatmul.f32.gmra.mxu0 %v2372_v26  ;;  %1270 = vmatmul.f32.gmra.mxu1 %v2375_v27  ;;  %3009 = vst [vmem:[#allocation14_spill] sm:$0xff] %v2499_v38  ;;  %v780_v9 = vld [vmem:[#allocation2 + $0x8b0] sm:$0xff]  ;;  %v909_v5 = vld [vmem:[#allocation2 + $0xcb8] sm:$0xff]  ;;  %v2528_v41 = vadd.f32 %v2442_v56, %v2440_v0  ;;  %v1495_v8 = vadd.f32 %v1494_v60, %v2499_v38 }
 0x126   :  { %1296 = vmatmul.f32.gmra.mxu2 %v2372_v26  ;;  %1322 = vmatmul.f32.gmra.mxu3 %v2375_v27  ;;  %v2478_v24 = vpop.f32.mrf.mxu0  ;;  %v2480_v25 = vpop.f32.mrf.mxu1  ;;  %3010 = vst [vmem:[#allocation15_spill] sm:$0xff] %v2503_v54  ;;  %v908_v10 = vld [vmem:[#allocation2 + $0xcb0] sm:$0xff]  ;;  %v2538_v0 = vadd.f32 %v2448_v19, %v2446_v18 }
 0x127   :  { %1334 = vmatpush.msrb.mxu0 %v820_v62  ;;  %1360 = vmatpush.msrb.mxu1 %v948_v63  ;;  %v1487_v63 = vadd.f32 %v1486_v20, %v2484_v30  ;;  %3011 = vst [vmem:[#allocation16_spill] sm:$0xff] %v2514_v61  ;;  %v764_v56 = vld [vmem:[#allocation2 + $0x830] sm:$0xff] }
 0x128   :  { %1386 = vmatpush.msrb.mxu2 %v821_v1  ;;  %1412 = vmatpush.msrb.mxu3 %v949_v4  ;;  %v1504_v1 = vadd.f32 %v1503_v45, %v2489_v42  ;;  %v781_v4 = vld [vmem:[#allocation2 + $0x8b8] sm:$0xff]  ;;  %3013 = vst [vmem:[#allocation18_spill] sm:$0xff] %v2524_v40  ;;  %v2551_v45 = vadd.f32 %v2436_v47, %v2434_v46 }
 0x129   :  { %1335 = vmatpush.msrb.mxu0 %v812_v35  ;;  %1361 = vmatpush.msrb.mxu1 %v940_v36  ;;  %v2519_v35 = vadd.f32 %v2454_v34, %v2452_v33  ;;  %v1488_v36 = vadd.f32 %v1487_v63, %v2495_v52  ;;  %3014 = vst [vmem:[#allocation19_spill] sm:$0xff] %v2528_v41 }
 0x12a   :  { %1387 = vmatpush.msrb.mxu2 %v813_v16  ;;  %1413 = vmatpush.msrb.mxu3 %v941_v17  ;;  %v772_v16 = vld [vmem:[#allocation2 + $0x870] sm:$0xff]  ;;  %v2532_v33 = vadd.f32 %v2458_v59, %v2456_v58  ;;  %3016 = vst [vmem:[#allocation21_spill] sm:$0xff] %v2538_v0  ;;  %v1505_v20 = vadd.f32 %v1504_v1, %v2514_v61  ;;  %v765_v59 = vld [vmem:[#allocation2 + $0x838] sm:$0xff] }
 0x12b   :  { %1336 = vmatpush.msrb.mxu0 %v804_v12  ;;  %1362 = vmatpush.msrb.mxu1 %v932_v13  ;;  %3012 = vst [vmem:[#allocation17_spill] sm:$0xff] %v2519_v35  ;;  %v900_v17 = vld [vmem:[#allocation2 + $0xc70] sm:$0xff]  ;;  %v773_v12 = vld [vmem:[#allocation2 + $0x878] sm:$0xff]  ;;  %v1489_v7 = vadd.f32 %v1488_v36, %v2503_v54  ;;  %v2543_v58 = vadd.f32 %v2430_v29, %v2428_v28 }
 0x12c   :  { %1388 = vmatpush.msrb.mxu2 %v805_v31  ;;  %1414 = vmatpush.msrb.mxu3 %v933_v32  ;;  %v901_v13 = vld [vmem:[#allocation2 + $0xc78] sm:$0xff]  ;;  %3015 = vst [vmem:[#allocation20_spill] sm:$0xff] %v2532_v33  ;;  %v892_v32 = vld [vmem:[#allocation2 + $0xc30] sm:$0xff]  ;;  %v1506_v19 = vadd.f32 %v1505_v20, %v2528_v41  ;;  %v1496_v29 = vadd.f32 %v1495_v8, %v2524_v40 }
 0x12d   :  { %1337 = vmatpush.msrb.mxu0 %v796_v43  ;;  %1363 = vmatpush.msrb.mxu1 %v924_v44  ;;  %v2505_v55 = vpop.f32.mrf.mxu2  ;;  %v2507_v62 = vpop.f32.mrf.mxu3  ;;  %3017 = vst [vmem:[#allocation22_spill] sm:$0xff] %v2543_v58  ;;  %v893_v43 = vld [vmem:[#allocation2 + $0xc38] sm:$0xff]  ;;  %v1490_v44 = vadd.f32 %v1489_v7, %v2519_v35 }
 0x12e   :  { %1389 = vmatpush.msrb.mxu2 %v797_v53  ;;  %1415 = vmatpush.msrb.mxu3 %v925_v48  ;;  %v1507_v53 = vadd.f32 %v1506_v19, %v2538_v0  ;;  %v2560_v48 = vadd.f32 %v2480_v25, %v2478_v24 }
 0x12f   :  { %1338 = vmatpush.msrb.mxu0 %v788_v22  ;;  %1364 = vmatpush.msrb.mxu1 %v916_v23  ;;  %v1491_v28 = vadd.f32 %v1490_v44, %v2532_v33  ;;  %v1497_v22 = vadd.f32 %v1496_v29, %v2543_v58 }
 0x130   :  { %1390 = vmatpush.msrb.mxu2 %v789_v50  ;;  %1416 = vmatpush.msrb.mxu3 %v917_v51  ;;  %v648_v34 = vpop.f32.mrf.mxu0  ;;  %v674_v31 = vpop.f32.mrf.mxu1  ;;  %v2570_v51 = vadd.f32 %v2507_v62, %v2505_v55 }
 0x131   :  { %1339 = vmatpush.msrb.mxu0 %v780_v9  ;;  %1365 = vmatpush.msrb.mxu1 %v908_v10  ;;  %v2546_v18 = vadd.f32 %v674_v31, %v648_v34  ;;  %v1498_v24 = vadd.f32 %v1497_v22, %v2551_v45 }
 0x132   :  { %1391 = vmatpush.msrb.mxu2 %v781_v4  ;;  %1417 = vmatpush.msrb.mxu3 %v909_v5 }
 0x133   :  { %1340 = vmatpush.msrb.mxu0 %v772_v16  ;;  %1366 = vmatpush.msrb.mxu1 %v900_v17  ;;  %3018 = vst [vmem:[#allocation23_spill] sm:$0xff] %v2546_v18  ;;  %v1508_v50 = vadd.f32 %v1507_v53, %v2546_v18  ;;  %v1499_v63 = vadd.f32 %v1498_v24, %v2560_v48 }
 0x134   :  { %1392 = vmatpush.msrb.mxu2 %v773_v12  ;;  %1418 = vmatpush.msrb.mxu3 %v901_v13 }
 0x135   :  { %1341 = vmatpush.msrb.mxu0 %v764_v56  ;;  %1367 = vmatpush.msrb.mxu1 %v892_v32 }
 0x136   :  { %1393 = vmatpush.msrb.mxu2 %v765_v59  ;;  %1419 = vmatpush.msrb.mxu3 %v893_v43 }
 0x137   :  { %1342 = vmatmul.f32.vlgmr.msrb.gmra.mxu0 %v2352_v39  ;;  %1368 = vmatmul.f32.vlgmr.msrb.gmra.mxu1 %v2355_v49  ;;  %v700_v46 = vpop.f32.mrf.mxu2  ;;  %v726_v47 = vpop.f32.mrf.mxu3 }
 0x138   :  { %1394 = vmatmul.f32.vlgmr.msrb.gmra.mxu2 %v2352_v39  ;;  %1420 = vmatmul.f32.vlgmr.msrb.gmra.mxu3 %v2355_v49  ;;  %v2565_v23 = vadd.f32 %v726_v47, %v700_v46  ;;  %v1500_v39 = vadd.f32 %v1499_v63, %v2570_v51 }
 0x139   :  { %1492 = vadd.xlane.f32.xlu0 %v1491_v28 }
 0x13a   :  { %3019 = vst [vmem:[#allocation24_spill] sm:$0xff] %v2565_v23  ;;  %v1509_v25 = vadd.f32 %v1508_v50, %v2565_v23 }
 0x13c   :  { %1510 = vadd.xlane.f32.xlu1 %v1509_v25 }
 0x13f   :  { %1345 = vmatmul.f32.gmra.mxu0 %v2360_v2  ;;  %1371 = vmatmul.f32.gmra.mxu1 %v2363_v3 }
 0x140   :  { %1397 = vmatmul.f32.gmra.mxu2 %v2360_v2  ;;  %1423 = vmatmul.f32.gmra.mxu3 %v2363_v3 }
 0x141   :  { %1501 = vadd.xlane.f32.xlu0 %v1500_v39 }
 0x147   :  { %1348 = vmatmul.f32.gmra.mxu0 %v2372_v26  ;;  %1374 = vmatmul.f32.gmra.mxu1 %v2375_v27 }
 0x148   :  { %1400 = vmatmul.f32.gmra.mxu2 %v2372_v26  ;;  %1426 = vmatmul.f32.gmra.mxu3 %v2375_v27 }
 0x14a   :  { %v1031_v49 = vpop.f32.mrf.mxu0  ;;  %v1057_v55 = vpop.f32.mrf.mxu1 }
 0x14b   :  { %v2584_v22 = vadd.f32 %v1057_v55, %v1031_v49 }
 0x151   :  { %v1083_v62 = vpop.f32.mrf.mxu2  ;;  %v1109_v60 = vpop.f32.mrf.mxu3 }
 0x152   :  { %v2586_v50 = vadd.f32 %v1109_v60, %v1083_v62 }
 0x154   :  { %v1034_v9 = vpop.f32.mrf.mxu0  ;;  %v1060_v10 = vpop.f32.mrf.mxu1  ;;  %v1537_v63 = vadd.f32 %v2586_v50, %v2584_v22 }
 0x155   :  { %v2597_v42 = vadd.f32 %v1060_v10, %v1034_v9 }
 0x15b   :  { %v1086_v1 = vpop.f32.mrf.mxu2  ;;  %v1112_v4 = vpop.f32.mrf.mxu3 }
 0x15c   :  { %v2599_v49 = vadd.f32 %v1112_v4, %v1086_v1 }
 0x15e   :  { %v1037_v2 = vpop.f32.mrf.mxu0  ;;  %v1063_v5 = vpop.f32.mrf.mxu1  ;;  %v1546_v9 = vadd.f32 %v2599_v49, %v2597_v42 }
 0x165   :  { %v1089_v3 = vpop.f32.mrf.mxu2  ;;  %v1115_v36 = vpop.f32.mrf.mxu3 }
 0x168   :  { %v1135_v16 = vpop.f32.mrf.mxu0  ;;  %v1161_v17 = vpop.f32.mrf.mxu1 }
 0x169   :  { %v2588_v24 = vadd.f32 %v1161_v17, %v1135_v16 }
 0x16b   :  { %v1538_v61 = vadd.f32 %v1537_v63, %v2588_v24 }
 0x16f   :  { %v1187_v12 = vpop.f32.mrf.mxu2  ;;  %v1213_v13 = vpop.f32.mrf.mxu3 }
 0x170   :  { %v2590_v25 = vadd.f32 %v1213_v13, %v1187_v12 }
 0x172   :  { %v1138_v34 = vpop.f32.mrf.mxu0  ;;  %v1164_v26 = vpop.f32.mrf.mxu1  ;;  %3020 = vst [vmem:[#allocation25_spill] sm:$0xff] %v2590_v25  ;;  %v1539_v62 = vadd.f32 %v1538_v61, %v2590_v25 }
 0x173   :  { %v2604_v60 = vadd.f32 %v1164_v26, %v1138_v34  ;;  %v2620_v26 = vadd.f32 %v1063_v5, %v1037_v2 }
 0x179   :  { %v1190_v31 = vpop.f32.mrf.mxu2  ;;  %v1216_v27 = vpop.f32.mrf.mxu3 }
 0x17a   :  { %v2609_v12 = vadd.f32 %v1216_v27, %v1190_v31  ;;  %v2622_v31 = vadd.f32 %v1115_v36, %v1089_v3 }
 0x17c   :  { %v1141_v7 = vpop.f32.mrf.mxu0  ;;  %v1167_v8 = vpop.f32.mrf.mxu1  ;;  %v1555_v5 = vadd.f32 %v2622_v31, %v2620_v26 }
 0x183   :  { %v1193_v56 = vpop.f32.mrf.mxu2  ;;  %v1219_v32 = vpop.f32.mrf.mxu3 }
 0x184   :  { %v2633_v63 = vadd.f32 %v1219_v32, %v1193_v56 }
 0x18e   :  { %v1239_v20 = vpop.f32.mrf.mxu0  ;;  %v1265_v59 = vpop.f32.mrf.mxu1 }
 0x18f   :  { %v2594_v18 = vadd.f32 %v1265_v59, %v1239_v20 }
 0x191   :  { %3021 = vst [vmem:[#allocation26_spill] sm:$0xff] %v2594_v18  ;;  %v1540_v17 = vadd.f32 %v1539_v62, %v2594_v18 }
 0x195   :  { %v1291_v43 = vpop.f32.mrf.mxu2  ;;  %v1317_v44 = vpop.f32.mrf.mxu3 }
 0x196   :  { %v2601_v55 = vadd.f32 %v1317_v44, %v1291_v43  ;;  %v2628_v44 = vadd.f32 %v1167_v8, %v1141_v7 }
 0x198   :  { %v1242_v19 = vpop.f32.mrf.mxu0  ;;  %v1268_v28 = vpop.f32.mrf.mxu1  ;;  %3022 = vst [vmem:[#allocation27_spill] sm:$0xff] %v2601_v55  ;;  %v1541_v13 = vadd.f32 %v1540_v17, %v2601_v55  ;;  %v1556_v8 = vadd.f32 %v1555_v5, %v2628_v44 }
 0x199   :  { %v2614_v4 = vadd.f32 %v1268_v28, %v1242_v19 }
 0x19a   :  { %v1557_v32 = vadd.f32 %v1556_v8, %v2633_v63 }
 0x19f   :  { %v1294_v29 = vpop.f32.mrf.mxu2  ;;  %v1320_v53 = vpop.f32.mrf.mxu3 }
 0x1a0   :  { %v2624_v27 = vadd.f32 %v1320_v53, %v1294_v29 }
 0x1a2   :  { %v1245_v46 = vpop.f32.mrf.mxu0  ;;  %v1271_v47 = vpop.f32.mrf.mxu1 }
 0x1a3   :  { %v2638_v29 = vadd.f32 %v1271_v47, %v1245_v46 }
 0x1a5   :  { %v1558_v46 = vadd.f32 %v1557_v32, %v2638_v29 }
 0x1a9   :  { %v1297_v39 = vpop.f32.mrf.mxu2  ;;  %v1323_v23 = vpop.f32.mrf.mxu3 }
 0x1b4   :  { %v1343_v0 = vpop.f32.mrf.mxu0  ;;  %v1369_v41 = vpop.f32.mrf.mxu1 }
 0x1b5   :  { %v2606_v16 = vadd.f32 %v1369_v41, %v1343_v0  ;;  %v1547_v0 = vadd.f32 %v1546_v9, %v2604_v60 }
 0x1b7   :  { %3023 = vst [vmem:[#allocation28_spill] sm:$0xff] %v2606_v16  ;;  %v1542_v41 = vadd.f32 %v1541_v13, %v2606_v16  ;;  %v1548_v43 = vadd.f32 %v1547_v0, %v2609_v12  ;;  %v2644_v13 = vadd.f32 %v1323_v23, %v1297_v39  ;;  %v1511_v39 = vpop.xlane.xlu1 %1510 }
 0x1b9   :  { %v1549_v28 = vadd.f32 %v1548_v43, %v2614_v4  ;;  %v1559_v47 = vadd.f32 %v1558_v46, %v2644_v13 }
 0x1bb   :  { %v1395_v10 = vpop.f32.mrf.mxu2  ;;  %v1421_v1 = vpop.f32.mrf.mxu3  ;;  %v1550_v2 = vadd.f32 %v1549_v28, %v2624_v27 }
 0x1bc   :  { %v2616_v20 = vadd.f32 %v1421_v1, %v1395_v10  ;;  %v1346_v61 = vpop.f32.mrf.mxu0  ;;  %v1372_v34 = vpop.f32.mrf.mxu1 }
 0x1bd   :  { %v2630_v19 = vadd.f32 %v1372_v34, %v1346_v61 }
 0x1be   :  { %3024 = vst [vmem:[#allocation29_spill] sm:$0xff] %v2616_v20  ;;  %v1543_v59 = vadd.f32 %v1542_v41, %v2616_v20  ;;  %v1493_v41 = vpop.xlane.xlu0 %1492 }
 0x1bf   :  { %v1551_v7 = vadd.f32 %v1550_v2, %v2630_v19 }
 0x1c0   :  { %1544 = vadd.xlane.f32.xlu1 %v1543_v59 }
 0x1c3   :  { %v1398_v3 = vpop.f32.mrf.mxu2  ;;  %v1424_v36 = vpop.f32.mrf.mxu3 }
 0x1c4   :  { %v2640_v53 = vadd.f32 %v1424_v36, %v1398_v3  ;;  %v1349_v62 = vpop.f32.mrf.mxu0  ;;  %v1375_v17 = vpop.f32.mrf.mxu1 }
 0x1c5   :  { %v2648_v9 = vadd.f32 %v1375_v17, %v1349_v62 }
 0x1c6   :  { %v1552_v56 = vadd.f32 %v1551_v7, %v2640_v53  ;;  %v1502_v62 = vpop.xlane.xlu0 %1501 }
 0x1c7   :  { %v1560_v34 = vadd.f32 %v1559_v47, %v2648_v9 }
 0x1c8   :  { %1553 = vadd.xlane.f32.xlu2 %v1552_v56 }
 0x1cb   :  { %v1401_v10 = vpop.f32.mrf.mxu2  ;;  %v1427_v1 = vpop.f32.mrf.mxu3 }
 0x1cc   :  { %v2652_v61 = vadd.f32 %v1427_v1, %v1401_v10 }
 0x1ce   :  { %v1561_v23 = vadd.f32 %v1560_v34, %v2652_v61 }
 0x1d0   :  { %1562 = vadd.xlane.f32.xlu2 %v1561_v23 }
 0x233   :  { %v1545_v0 = vpop.xlane.xlu1 %1544 }
 0x234   :  { %v1564_v59 = vadd.f32 %v1545_v0, %v1493_v41 }
 0x236   :  { %v2656_v43 = vmul.f32 0.00048828125, %v1564_v59 }
 0x238   :  { %v1570_v28 = vsub.f32 %v2344_v6, %v2656_v43  ;;  %v1571_v2 = vsub.f32 %v2346_v11, %v2656_v43  ;;  %v1572_v5 = vsub.f32 %v2462_v57, %v2656_v43  ;;  %v1573_v3 = vsub.f32 %v2484_v30, %v2656_v43 }
 0x239   :  { %v1574_v36 = vsub.f32 %v2495_v52, %v2656_v43  ;;  %v1575_v56 = vsub.f32 %v2503_v54, %v2656_v43  ;;  %v1576_v32 = vsub.f32 %v2519_v35, %v2656_v43  ;;  %v1577_v46 = vsub.f32 %v2532_v33, %v2656_v43 }
 0x23a   :  { %v1594_v7 = vmul.f32 %v1570_v28, %v1570_v28  ;;  %v1595_v8 = vmul.f32 %v1571_v2, %v1571_v2  ;;  %v1596_v10 = vmul.f32 %v1572_v5, %v1572_v5  ;;  %v1645_v34 = vsub.f32 %v2584_v22, %v2656_v43 }
 0x23b   :  { %v1554_v17 = vpop.xlane.xlu2 %1553  ;;  %v1646_v23 = vsub.f32 %v2586_v50, %v2656_v43  ;;  %v1597_v0 = vmul.f32 %v1573_v3, %v1573_v3  ;;  %v1598_v59 = vmul.f32 %v1574_v36, %v1574_v36  ;;  %v1599_v2 = vmul.f32 %v1575_v56, %v1575_v56 }
 0x23c   :  { %v1565_v47 = vadd.f32 %v1554_v17, %v1502_v62  ;;  %v1618_v1 = vadd.f32 %v1595_v8, %v1594_v7  ;;  %v1600_v54 = vmul.f32 %v1576_v32, %v1576_v32  ;;  %v1601_v35 = vmul.f32 %v1577_v46, %v1577_v46 }
 0x23d   :  { %v1647_v33 = vsub.f32 %v2588_v24, %v2656_v43  ;;  %v1648_v8 = vsub.f32 %v2590_v25, %v2656_v43  ;;  %v1649_v36 = vsub.f32 %v2594_v18, %v2656_v43  ;;  %v1669_v17 = vmul.f32 %v1645_v34, %v1645_v34 }
 0x23e   :  { %v2678_v41 = vmul.f32 0.00048828125, %v1565_v47  ;;  %v1619_v28 = vadd.f32 %v1618_v1, %v1596_v10  ;;  %v1670_v56 = vmul.f32 %v1646_v23, %v1646_v23  ;;  %v1652_v34 = vsub.f32 %v2616_v20, %v2656_v43 }
 0x240   :  { %v1620_v62 = vadd.f32 %v1619_v28, %v1597_v0  ;;  %v1578_v5 = vsub.f32 %v2348_v21, %v2678_v41  ;;  %v1579_v7 = vsub.f32 %v2350_v37, %v2678_v41  ;;  %v1580_v3 = vsub.f32 %v2499_v38, %v2678_v41 }
 0x241   :  { %v1581_v46 = vsub.f32 %v2524_v40, %v2678_v41  ;;  %v1582_v0 = vsub.f32 %v2543_v58, %v2678_v41  ;;  %v1650_v28 = vsub.f32 %v2601_v55, %v2656_v43  ;;  %v1651_v38 = vsub.f32 %v2606_v16, %v2656_v43 }
 0x242   :  { %v1621_v32 = vadd.f32 %v1620_v62, %v1598_v59  ;;  %v1602_v47 = vmul.f32 %v1578_v5, %v1578_v5  ;;  %v1603_v10 = vmul.f32 %v1579_v7, %v1579_v7  ;;  %v1583_v59 = vsub.f32 %v2551_v45, %v2678_v41 }
 0x243   :  { %v1563_v1 = vpop.xlane.xlu2 %1562  ;;  %v1671_v62 = vmul.f32 %v1647_v33, %v1647_v33  ;;  %v1672_v5 = vmul.f32 %v1648_v8, %v1648_v8  ;;  %v1584_v40 = vsub.f32 %v2560_v48, %v2678_v41  ;;  %v1604_v58 = vmul.f32 %v1580_v3, %v1580_v3 }
 0x244   :  { %v1622_v23 = vadd.f32 %v1621_v32, %v1599_v2  ;;  %v1566_v7 = vadd.f32 %v1563_v1, %v1511_v39  ;;  %v1627_v37 = vadd.f32 %v1603_v10, %v1602_v47  ;;  %v1585_v55 = vsub.f32 %v2570_v51, %v2678_v41 }
 0x245   :  { %v1605_v16 = vmul.f32 %v1581_v46, %v1581_v46  ;;  %v1693_v18 = vadd.f32 %v1670_v56, %v1669_v17  ;;  %v1606_v25 = vmul.f32 %v1582_v0, %v1582_v0  ;;  %v1653_v2 = vsub.f32 %v2597_v42, %v2678_v41 }
 0x246   :  { %v1623_v21 = vadd.f32 %v1622_v23, %v1600_v54  ;;  %v1628_v20 = vadd.f32 %v1627_v37, %v1604_v58  ;;  %v1654_v33 = vsub.f32 %v2599_v49, %v2678_v41  ;;  %v1607_v8 = vmul.f32 %v1583_v59, %v1583_v59 }
 0x247   :  { %v1694_v32 = vadd.f32 %v1693_v18, %v1671_v62  ;;  %v1655_v3 = vsub.f32 %v2604_v60, %v2678_v41  ;;  %v2714_v54 = vmul.f32 0.00048828125, %v1566_v7  ;;  %v1608_v47 = vmul.f32 %v1584_v40, %v1584_v40 }
 0x248   :  { %v1624_v39 = vadd.f32 %v1623_v21, %v1601_v35  ;;  %v1629_v10 = vadd.f32 %v1628_v20, %v1605_v16  ;;  %v1673_v46 = vmul.f32 %v1649_v36, %v1649_v36  ;;  %v1656_v37 = vsub.f32 %v2609_v12, %v2678_v41 }
 0x249   :  { %v1695_v17 = vadd.f32 %v1694_v32, %v1672_v5  ;;  %v1677_v58 = vmul.f32 %v1653_v2, %v1653_v2  ;;  %v1678_v56 = vmul.f32 %v1654_v33, %v1654_v33  ;;  %v1609_v1 = vmul.f32 %v1585_v55, %v1585_v55  ;;  %v3025_v33 = vld [vmem:[#allocation13_spill] sm:$0xff] }
 0x24a   :  { %1625 = vadd.xlane.f32.xlu0 %v1624_v39  ;;  %v1630_v0 = vadd.f32 %v1629_v10, %v1606_v25  ;;  %v1674_v21 = vmul.f32 %v1650_v28, %v1650_v28  ;;  %v1657_v35 = vsub.f32 %v2614_v4, %v2678_v41  ;;  %v1675_v18 = vmul.f32 %v1651_v38, %v1651_v38 }
 0x24b   :  { %v1696_v23 = vadd.f32 %v1695_v17, %v1673_v46  ;;  %v1679_v59 = vmul.f32 %v1655_v3, %v1655_v3  ;;  %v1702_v62 = vadd.f32 %v1678_v56, %v1677_v58  ;;  %v1676_v16 = vmul.f32 %v1652_v34, %v1652_v34  ;;  %v3026_v17 = vld [vmem:[#allocation16_spill] sm:$0xff] }
 0x24c   :  { %v1631_v40 = vadd.f32 %v1630_v0, %v1607_v8  ;;  %v1586_v20 = vsub.f32 %v2470_v14, %v2714_v54  ;;  %v1587_v36 = vsub.f32 %v2474_v15, %v2714_v54  ;;  %v1658_v25 = vsub.f32 %v2624_v27, %v2678_v41  ;;  %v3027_v0 = vld [vmem:[#allocation19_spill] sm:$0xff] }
 0x24d   :  { %v1697_v5 = vadd.f32 %v1696_v23, %v1674_v21  ;;  %v1680_v55 = vmul.f32 %v1656_v37, %v1656_v37  ;;  %v1703_v28 = vadd.f32 %v1702_v62, %v1679_v59  ;;  %v1659_v38 = vsub.f32 %v2630_v19, %v2678_v41 }
 0x24e   :  { %v1632_v7 = vadd.f32 %v1631_v40, %v1608_v47  ;;  %v1681_v2 = vmul.f32 %v1657_v35, %v1657_v35  ;;  %v1588_v34 = vsub.f32 %v3025_v33, %v2714_v54  ;;  %v1610_v32 = vmul.f32 %v1586_v20, %v1586_v20 }
 0x24f   :  { %v1698_v39 = vadd.f32 %v1697_v5, %v1675_v18  ;;  %v1704_v8 = vadd.f32 %v1703_v28, %v1680_v55  ;;  %v1611_v3 = vmul.f32 %v1587_v36, %v1587_v36  ;;  %v1660_v46 = vsub.f32 %v2640_v53, %v2678_v41 }
 0x250   :  { %v1633_v10 = vadd.f32 %v1632_v7, %v1609_v1  ;;  %v1589_v37 = vsub.f32 %v3026_v17, %v2714_v54  ;;  %v1682_v47 = vmul.f32 %v1658_v25, %v1658_v25  ;;  %v1590_v21 = vsub.f32 %v3027_v0, %v2714_v54 }
 0x251   :  { %v1699_v58 = vadd.f32 %v1698_v39, %v1676_v16  ;;  %v1705_v56 = vadd.f32 %v1704_v8, %v1681_v2  ;;  %v1612_v35 = vmul.f32 %v1588_v34, %v1588_v34  ;;  %v1636_v23 = vadd.f32 %v1611_v3, %v1610_v32  ;;  %v3028_v16 = vld [vmem:[#allocation21_spill] sm:$0xff]  ;;  %v3029_v34 = vld [vmem:[#allocation23_spill] sm:$0xff] }
 0x252   :  { %1634 = vadd.xlane.f32.xlu1 %v1633_v10  ;;  %v1661_v18 = vsub.f32 %v2620_v26, %v2714_v54  ;;  %v1662_v1 = vsub.f32 %v2622_v31, %v2714_v54  ;;  %v1683_v59 = vmul.f32 %v1659_v38, %v1659_v38  ;;  %v1663_v40 = vsub.f32 %v2628_v44, %v2714_v54 }
 0x253   :  { %1700 = vadd.xlane.f32.xlu0 %v1699_v58  ;;  %v1706_v62 = vadd.f32 %v1705_v56, %v1682_v47  ;;  %v1591_v20 = vsub.f32 %v3028_v16, %v2714_v54  ;;  %v1613_v36 = vmul.f32 %v1589_v37, %v1589_v37  ;;  %v1637_v5 = vadd.f32 %v1636_v23, %v1612_v35  ;;  %v3030_v37 = vld [vmem:[#allocation24_spill] sm:$0xff] }
 0x254   :  { %v1664_v55 = vsub.f32 %v2633_v63, %v2714_v54  ;;  %v1685_v28 = vmul.f32 %v1661_v18, %v1661_v18  ;;  %v1686_v7 = vmul.f32 %v1662_v1, %v1662_v1  ;;  %v1684_v2 = vmul.f32 %v1660_v46, %v1660_v46 }
 0x255   :  { %v1707_v25 = vadd.f32 %v1706_v62, %v1683_v59  ;;  %v1592_v39 = vsub.f32 %v3029_v34, %v2714_v54  ;;  %v1614_v38 = vmul.f32 %v1590_v21, %v1590_v21  ;;  %v1638_v8 = vadd.f32 %v1637_v5, %v1613_v36 }
 0x256   :  { %v1665_v32 = vsub.f32 %v2638_v29, %v2714_v54  ;;  %v1687_v3 = vmul.f32 %v1663_v40, %v1663_v40  ;;  %v1711_v10 = vadd.f32 %v1686_v7, %v1685_v28  ;;  %v1593_v47 = vsub.f32 %v3030_v37, %v2714_v54 }
 0x257   :  { %v1708_v58 = vadd.f32 %v1707_v25, %v1684_v2  ;;  %v1615_v56 = vmul.f32 %v1591_v20, %v1591_v20  ;;  %v1639_v35 = vadd.f32 %v1638_v8, %v1614_v38  ;;  %v1666_v23 = vsub.f32 %v2644_v13, %v2714_v54 }
 0x258   :  { %v1688_v46 = vmul.f32 %v1664_v55, %v1664_v55  ;;  %v1712_v18 = vadd.f32 %v1711_v10, %v1687_v3  ;;  %v1616_v1 = vmul.f32 %v1592_v39, %v1592_v39  ;;  %v1689_v59 = vmul.f32 %v1665_v32, %v1665_v32 }
 0x259   :  { %v1640_v21 = vadd.f32 %v1639_v35, %v1615_v56  ;;  %v1617_v36 = vmul.f32 %v1593_v47, %v1593_v47  ;;  %v1667_v40 = vsub.f32 %v2648_v9, %v2714_v54  ;;  %v1690_v25 = vmul.f32 %v1666_v23, %v1666_v23 }
 0x25a   :  { %1709 = vadd.xlane.f32.xlu1 %v1708_v58  ;;  %v1713_v62 = vadd.f32 %v1712_v18, %v1688_v46  ;;  %v1668_v2 = vsub.f32 %v2652_v61, %v2714_v54  ;;  %v2248_v35 = vmov 0  }
 0x25b   :  { %v1641_v5 = vadd.f32 %v1640_v21, %v1616_v1  ;;  %v1691_v55 = vmul.f32 %v1667_v40, %v1667_v40  ;;  %2149 = vset.pattern.permute.xlu0 %v2248_v35  ;;  %2150 = vset.pattern.permute.xlu2 %v2248_v35 }
 0x25c   :  { %v1714_v28 = vadd.f32 %v1713_v62, %v1689_v59  ;;  %v1692_v8 = vmul.f32 %v1668_v2, %v1668_v2  ;;  %2151 = vset.pattern.permute.xlu1 %v2248_v35  ;;  %v1726_v2 = vld [vmem:[%s2978_s2] sm:$0xff] }
 0x25d   :  { %v1642_v7 = vadd.f32 %v1641_v5, %v1617_v36 }
 0x25e   :  { %v1715_v20 = vadd.f32 %v1714_v28, %v1690_v25 }
 0x25f   :  { %1643 = vadd.xlane.f32.xlu2 %v1642_v7 }
 0x260   :  { %v1716_v38 = vadd.f32 %v1715_v20, %v1691_v55 }
 0x262   :  { %v1717_v39 = vadd.f32 %v1716_v38, %v1692_v8 }
 0x267   :  { %1718 = vadd.xlane.f32.xlu2 %v1717_v39 }
 0x2bd   :  { %v1626_v32 = vpop.xlane.xlu0 %1625 }
 0x2c5   :  { %v1635_v3 = vpop.xlane.xlu1 %1634 }
 0x2c6   :  { %v1701_v10 = vpop.xlane.xlu0 %1700 }
 0x2c7   :  { %v1720_v58 = vadd.f32 %v1701_v10, %v1626_v32 }
 0x2c9   :  { %v1723_v47 = vmul.f32 0.00048828125, %v1720_v58  ;;  %v1765_v58 = vld [vmem:[%s2979_s3] sm:$0xff] }
 0x2cb   :  { %v1729_v56 = vadd.f32 1e-05, %v1723_v47 }
 0x2cd   :  { %2152 = vrsqrt.f32 %v1729_v56  ;;  %v1710_v23 = vpop.xlane.xlu1 %1709  ;;  %vm1738_vm1 = vweird.f32 %v1729_v56 }
 0x2ce   :  { %v1721_v46 = vadd.f32 %v1710_v23, %v1635_v3  ;;  %v1727_v23 = vld [vmem:[%s2978_s2 + $0x8] sm:$0xff] }
 0x2d0   :  { %v1724_v18 = vmul.f32 0.00048828125, %v1721_v46 }
 0x2d2   :  { %v1730_v1 = vadd.f32 1e-05, %v1724_v18  ;;  %v1644_v59 = vpop.xlane.xlu2 %1643 }
 0x2d3   :  { %v2153_v21 = vpop.eup %2152 }
 0x2d4   :  { %v1733_v62 = vmul.f32 %v2153_v21, %v1729_v56  ;;  %2154 = vrsqrt.f32 %v1730_v1  ;;  %vm1739_vm0 = vweird.f32 %v2153_v21  ;;  %vm1748_vm4 = vweird.f32 %v1730_v1 }
 0x2d5   :  { %vm1740_vm2 = vmor %vm1738_vm1, %vm1739_vm0 }
 0x2d6   :  { %v1734_v36 = vmul.f32 %v2153_v21, %v1733_v62 }
 0x2d8   :  { %v1735_v5 = vmul.f32 0.5, %v1734_v36 }
 0x2da   :  { %v2155_v40 = vpop.eup %2154  ;;  %v1736_v25 = vsub.f32 1.5, %v1735_v5  ;;  %v1719_v7 = vpop.xlane.xlu2 %1718 }
 0x2db   :  { %v1743_v28 = vmul.f32 %v2155_v40, %v1730_v1  ;;  %v1722_v20 = vadd.f32 %v1719_v7, %v1644_v59  ;;  %vm1749_vm3 = vweird.f32 %v2155_v40 }
 0x2dc   :  { %v1737_v55 = vmul.f32 %v2153_v21, %v1736_v25  ;;  %vm1750_vm5 = vmor %vm1748_vm4, %vm1749_vm3 }
 0x2dd   :  { %v1744_v38 = vmul.f32 %v2155_v40, %v1743_v28  ;;  %v1725_v8 = vmul.f32 0.00048828125, %v1722_v20 }
 0x2de   :  { %v1741_v39 = vsel %vm1740_vm2, %v2153_v21, %v1737_v55  ;;  %v1767_v55 = vld [vmem:[%s2979_s3 + $0x10] sm:$0xff] }
 0x2df   :  { %v1745_v32 = vmul.f32 0.5, %v1744_v38  ;;  %v1762_v3 = vmul.f32 %v1741_v39, %v1726_v2  ;;  %v1731_v10 = vadd.f32 1e-05, %v1725_v8 }
 0x2e1   :  { %v1746_v47 = vsub.f32 1.5, %v1745_v32  ;;  %1776 = vperm.xlu0 %2149, %v1762_v3   ;;  %v1768_v56 = vmul.f32 %v1762_v3, %v2656_v43  ;;  %2156 = vrsqrt.f32 %v1731_v10  ;;  %v1766_v43 = vld [vmem:[%s2979_s3 + $0x8] sm:$0xff]  ;;  %vm1758_vm7 = vweird.f32 %v1731_v10 }
 0x2e3   :  { %v1771_v35 = vsub.f32 %v1765_v58, %v1768_v56  ;;  %v1747_v46 = vmul.f32 %v2155_v40, %v1746_v47 }
 0x2e5   :  { %1815 = vperm.xlu2 %2150, %v1771_v35   ;;  %v1751_v18 = vsel %vm1750_vm5, %v2155_v40, %v1747_v46  ;;  %v1728_v40 = vld [vmem:[%s2978_s2 + $0x10] sm:$0xff]  ;;  %s2249_s2 = smov [#allocation7]  }
 0x2e6   :  { %v1763_v21 = vmul.f32 %v1751_v18, %v1727_v23  ;;  %v3032_v18 = vld [vmem:[#allocation17_spill] sm:$0xff]  ;;  %s2120_s3 = sshll.u32 %s2249_s2, 4  ;;  %s2121_s3 = int_to_ptr.vmem [resolvable:$true] %s2120_s3 }
 0x2e7   :  { %v2157_v59 = vpop.eup %2156 }
 0x2e8   :  { %1781 = vperm.xlu1 %2151, %v1763_v21   ;;  %v1753_v62 = vmul.f32 %v2157_v59, %v1731_v10  ;;  %v1769_v36 = vmul.f32 %v1763_v21, %v2678_v41  ;;  %vm1759_vm6 = vweird.f32 %v2157_v59 }
 0x2e9   :  { %vm1760_vm8 = vmor %vm1758_vm7, %vm1759_vm6 }
 0x2ea   :  { %v1754_v5 = vmul.f32 %v2157_v59, %v1753_v62  ;;  %v1772_v25 = vsub.f32 %v1766_v43, %v1769_v36 }
 0x2ec   :  { %v1755_v1 = vmul.f32 0.5, %v1754_v5 }
 0x2ee   :  { %v1756_v28 = vsub.f32 1.5, %v1755_v1 }
 0x2f0   :  { %1820 = vperm.xlu1 %2151, %v1772_v25   ;;  %v1757_v7 = vmul.f32 %v2157_v59, %v1756_v28 }
 0x2f2   :  { %v1761_v20 = vsel %vm1760_vm8, %v2157_v59, %v1757_v7 }
 0x2f3   :  { %v1764_v2 = vmul.f32 %v1761_v20, %v1728_v40 }
 0x2f5   :  { %1786 = vperm.xlu2 %2150, %v1764_v2   ;;  %v1770_v41 = vmul.f32 %v1764_v2, %v2714_v54 }
 0x2f7   :  { %v1773_v38 = vsub.f32 %v1767_v55, %v1770_v41 }
 0x2fd   :  { %1825 = vperm.xlu2 %2150, %v1773_v38  }
 0x33f   :  { %v2779_v8 = vpop.permute.xlu2 %1815 }
 0x34f   :  { %v2781_v39 = vpop.permute.xlu2 %1786 }
 0x350   :  { %v2785_v32 = vmul.f32 %v2781_v39, %v2470_v14  ;;  %v2789_v3 = vmul.f32 %v2781_v39, %v2474_v15  ;;  %v2793_v54 = vmul.f32 %v2781_v39, %v3025_v33  ;;  %v2797_v10 = vmul.f32 %v2781_v39, %v3026_v17 }
 0x351   :  { %v2801_v58 = vmul.f32 %v2781_v39, %v3027_v0  ;;  %v2805_v14 = vmul.f32 %v2781_v39, %v3028_v16  ;;  %v2809_v15 = vmul.f32 %v2781_v39, %v3029_v34  ;;  %v2813_v33 = vmul.f32 %v2781_v39, %v3030_v37 }
 0x352   :  { %v2817_v17 = vmul.f32 %v2781_v39, %v2620_v26  ;;  %v2821_v0 = vmul.f32 %v2781_v39, %v2622_v31  ;;  %v2825_v16 = vmul.f32 %v2781_v39, %v2628_v44  ;;  %v2829_v34 = vmul.f32 %v2781_v39, %v2633_v63  ;;  %v3031_v31 = vld [vmem:[#allocation15_spill] sm:$0xff]  ;;  %v3033_v44 = vld [vmem:[#allocation20_spill] sm:$0xff] }
 0x353   :  { %v1777_v47 = vpop.permute.xlu0 %1776 }
 0x354   :  { %v1789_v37 = vmul.f32 %v1777_v47, %v2344_v6  ;;  %v1790_v56 = vmul.f32 %v1777_v47, %v2346_v11  ;;  %v1791_v35 = vmul.f32 %v1777_v47, %v2462_v57  ;;  %v1792_v26 = vmul.f32 %v1777_v47, %v2484_v30 }
 0x355   :  { %v1793_v23 = vmul.f32 %v1777_v47, %v2495_v52  ;;  %v1794_v46 = vmul.f32 %v1777_v47, %v3031_v31  ;;  %v1795_v21 = vmul.f32 %v1777_v47, %v3032_v18  ;;  %v1796_v59 = vmul.f32 %v1777_v47, %v3033_v44  ;;  %v3034_v31 = vld [vmem:[#allocation25_spill] sm:$0xff]  ;;  %v3035_v18 = vld [vmem:[#allocation26_spill] sm:$0xff]  ;;  %v3036_v44 = vld [vmem:[#allocation27_spill] sm:$0xff] }
 0x356   :  { %v1828_v62 = vadd.f32 %v2779_v8, %v1789_v37  ;;  %v1829_v63 = vadd.f32 %v2779_v8, %v1790_v56  ;;  %v1830_v6 = vadd.f32 %v2779_v8, %v1791_v35  ;;  %v1831_v11 = vadd.f32 %v2779_v8, %v1792_v26 }
 0x357   :  { %v1832_v57 = vadd.f32 %v2779_v8, %v1793_v23  ;;  %v1833_v30 = vadd.f32 %v2779_v8, %v1794_v46  ;;  %v1834_v52 = vadd.f32 %v2779_v8, %v1795_v21  ;;  %v1835_v36 = vadd.f32 %v2779_v8, %v1796_v59 }
 0x358   :  { %vm1852_vm9 = vcmp.gt.f32.partialorder %v1828_v62, 0.0  ;;  %vm1853_vm10 = vcmp.gt.f32.partialorder %v1829_v63, 0.0  ;;  %vm1854_vm11 = vcmp.gt.f32.partialorder %v1830_v6, 0.0  ;;  %vm1855_vm12 = vcmp.gt.f32.partialorder %v1831_v11, 0.0 }
 0x359   :  { %vm1856_vm13 = vcmp.gt.f32.partialorder %v1832_v57, 0.0  ;;  %vm1857_vm14 = vcmp.gt.f32.partialorder %v1833_v30, 0.0  ;;  %vm1858_vm15 = vcmp.gt.f32.partialorder %v1834_v52, 0.0  ;;  %vm1859_vm0 = vcmp.gt.f32.partialorder %v1835_v36, 0.0 }
 0x35a   :  { %v1876_v5 = vmul.f32 0.1, %v1828_v62  ;;  %v1877_v43 = vmul.f32 0.1, %v1829_v63  ;;  %v1878_v1 = vmul.f32 0.1, %v1830_v6  ;;  %v1972_v25 = vmul.f32 %v1777_v47, %v2584_v22 }
 0x35b   :  { %v1879_v28 = vmul.f32 0.1, %v1831_v11  ;;  %v1880_v40 = vmul.f32 0.1, %v1832_v57  ;;  %v1881_v7 = vmul.f32 0.1, %v1833_v30  ;;  %v1973_v20 = vmul.f32 %v1777_v47, %v2586_v50 }
 0x35c   :  { %v1882_v2 = vmul.f32 0.1, %v1834_v52  ;;  %v1883_v41 = vmul.f32 0.1, %v1835_v36  ;;  %v1900_v55 = vsel %vm1852_vm9, %v1828_v62, %v1876_v5  ;;  %v1901_v38 = vsel %vm1853_vm10, %v1829_v63, %v1877_v43  ;;  %v3037_v62 = vld [vmem:[#allocation28_spill] sm:$0xff] }
 0x35d   :  { %v1902_v37 = vsel %vm1854_vm11, %v1830_v6, %v1878_v1  ;;  %v1903_v56 = vsel %vm1855_vm12, %v1831_v11, %v1879_v28  ;;  %v1904_v35 = vsel %vm1856_vm13, %v1832_v57, %v1880_v40  ;;  %v1905_v26 = vsel %vm1857_vm14, %v1833_v30, %v1881_v7  ;;  %1924 = vst [vmem:[#allocation7] sm:$0xff] %v1900_v55  ;;  %v3038_v6 = vld [vmem:[#allocation29_spill] sm:$0xff] }
 0x35e   :  { %v1906_v22 = vsel %vm1858_vm15, %v1834_v52, %v1882_v2  ;;  %v1907_v23 = vsel %vm1859_vm0, %v1835_v36, %v1883_v41  ;;  %1925 = vst [vmem:[#allocation7 + $0x8] sm:$0xff] %v1901_v38  ;;  %v1974_v50 = vmul.f32 %v1777_v47, %v2588_v24  ;;  %v1975_v46 = vmul.f32 %v1777_v47, %v3034_v31 }
 0x35f   :  { %1926 = vst [vmem:[#allocation7 + $0x10] sm:$0xff] %v1902_v37  ;;  %v1976_v21 = vmul.f32 %v1777_v47, %v3035_v18  ;;  %v1977_v59 = vmul.f32 %v1777_v47, %v3036_v44  ;;  %v1978_v63 = vmul.f32 %v1777_v47, %v3037_v62  ;;  %v1979_v11 = vmul.f32 %v1777_v47, %v3038_v6 }
 0x360   :  { %1927 = vst [vmem:[#allocation7 + $0x18] sm:$0xff] %v1903_v56  ;;  %v1996_v57 = vadd.f32 %v1972_v25, %v2779_v8  ;;  %v1997_v30 = vadd.f32 %v1973_v20, %v2779_v8  ;;  %v1998_v52 = vadd.f32 %v1974_v50, %v2779_v8  ;;  %v1999_v24 = vadd.f32 %v1975_v46, %v2779_v8  ;;  %v1826_v56 = vpop.permute.xlu2 %1825 }
 0x361   :  { %1928 = vst [vmem:[#allocation7 + $0x20] sm:$0xff] %v1904_v35  ;;  %v2000_v36 = vadd.f32 %v1976_v21, %v2779_v8  ;;  %v2001_v5 = vadd.f32 %v1977_v59, %v2779_v8  ;;  %v2002_v43 = vadd.f32 %v1978_v63, %v2779_v8  ;;  %v2003_v1 = vadd.f32 %v1979_v11, %v2779_v8 }
 0x362   :  { %1929 = vst [vmem:[#allocation7 + $0x28] sm:$0xff] %v1905_v26  ;;  %vm2020_vm1 = vcmp.gt.f32.partialorder %v1996_v57, 0.0  ;;  %vm2021_vm2 = vcmp.gt.f32.partialorder %v1997_v30, 0.0  ;;  %vm2022_vm3 = vcmp.gt.f32.partialorder %v1998_v52, 0.0  ;;  %vm2023_vm4 = vcmp.gt.f32.partialorder %v1999_v24, 0.0 }
 0x363   :  { %1930 = vst [vmem:[#allocation7 + $0x30] sm:$0xff] %v1906_v22  ;;  %vm2024_vm5 = vcmp.gt.f32.partialorder %v2000_v36, 0.0  ;;  %vm2025_vm6 = vcmp.gt.f32.partialorder %v2001_v5, 0.0  ;;  %vm2026_vm7 = vcmp.gt.f32.partialorder %v2002_v43, 0.0  ;;  %vm2027_vm8 = vcmp.gt.f32.partialorder %v2003_v1, 0.0 }
 0x364   :  { %1931 = vst [vmem:[#allocation7 + $0x38] sm:$0xff] %v1907_v23  ;;  %v2044_v47 = vmul.f32 0.1, %v1996_v57  ;;  %v2045_v25 = vmul.f32 0.1, %v1997_v30  ;;  %v2873_v28 = vmul.f32 %v2781_v39, %v2638_v29  ;;  %v2877_v8 = vmul.f32 %v2781_v39, %v2644_v13 }
 0x365   :  { %v2046_v40 = vmul.f32 0.1, %v1998_v52  ;;  %v2047_v7 = vmul.f32 0.1, %v1999_v24  ;;  %v2048_v20 = vmul.f32 0.1, %v2000_v36  ;;  %v1994_v2 = vmul.f32 %v2781_v39, %v2648_v9 }
 0x366   :  { %v2049_v41 = vmul.f32 0.1, %v2001_v5  ;;  %v2050_v55 = vmul.f32 0.1, %v2002_v43  ;;  %v2051_v38 = vmul.f32 0.1, %v2003_v1  ;;  %v2068_v37 = vsel %vm2020_vm1, %v1996_v57, %v2044_v47 }
 0x367   :  { %v2069_v35 = vsel %vm2021_vm2, %v1997_v30, %v2045_v25  ;;  %v2070_v29 = vsel %vm2022_vm3, %v1998_v52, %v2046_v40  ;;  %v2071_v26 = vsel %vm2023_vm4, %v1999_v24, %v2047_v7  ;;  %v2072_v13 = vsel %vm2024_vm5, %v2000_v36, %v2048_v20  ;;  %2092 = vst [vmem:[#allocation7 + $0xc0] sm:$0xff] %v2068_v37  ;;  %v3039_v7 = vld [vmem:[#allocation11_spill] sm:$0xff] }
 0x368   :  { %v2073_v22 = vsel %vm2025_vm6, %v2001_v5, %v2049_v41  ;;  %v2074_v23 = vsel %vm2026_vm7, %v2002_v43, %v2050_v55  ;;  %v2075_v9 = vsel %vm2027_vm8, %v2003_v1, %v2051_v38  ;;  %2093 = vst [vmem:[#allocation7 + $0xc8] sm:$0xff] %v2069_v35  ;;  %v1995_v50 = vmul.f32 %v2781_v39, %v2652_v61 }
 0x369   :  { %2094 = vst [vmem:[#allocation7 + $0xd0] sm:$0xff] %v2070_v29  ;;  %v1844_v31 = vadd.f32 %v1826_v56, %v2785_v32  ;;  %v1845_v46 = vadd.f32 %v1826_v56, %v2789_v3  ;;  %v1846_v18 = vadd.f32 %v1826_v56, %v2793_v54  ;;  %v1847_v21 = vadd.f32 %v1826_v56, %v2797_v10 }
 0x36a   :  { %2095 = vst [vmem:[#allocation7 + $0xd8] sm:$0xff] %v2071_v26  ;;  %v1848_v44 = vadd.f32 %v1826_v56, %v2801_v58  ;;  %v1849_v59 = vadd.f32 %v1826_v56, %v2805_v14  ;;  %v1850_v62 = vadd.f32 %v1826_v56, %v2809_v15  ;;  %v1851_v63 = vadd.f32 %v1826_v56, %v2813_v33 }
 0x36b   :  { %2096 = vst [vmem:[#allocation7 + $0xe0] sm:$0xff] %v2072_v13  ;;  %vm1868_vm9 = vcmp.gt.f32.partialorder %v1844_v31, 0.0  ;;  %vm1869_vm10 = vcmp.gt.f32.partialorder %v1845_v46, 0.0  ;;  %vm1870_vm11 = vcmp.gt.f32.partialorder %v1846_v18, 0.0  ;;  %vm1871_vm12 = vcmp.gt.f32.partialorder %v1847_v21, 0.0  ;;  %v3040_v13 = vld [vmem:[#allocation12_spill] sm:$0xff] }
 0x36c   :  { %2097 = vst [vmem:[#allocation7 + $0xe8] sm:$0xff] %v2073_v22  ;;  %vm1872_vm13 = vcmp.gt.f32.partialorder %v1848_v44, 0.0  ;;  %vm1873_vm14 = vcmp.gt.f32.partialorder %v1849_v59, 0.0  ;;  %vm1874_vm15 = vcmp.gt.f32.partialorder %v1850_v62, 0.0  ;;  %vm1875_vm0 = vcmp.gt.f32.partialorder %v1851_v63, 0.0 }
 0x36d   :  { %2098 = vst [vmem:[#allocation7 + $0xf0] sm:$0xff] %v2074_v23  ;;  %v1892_v61 = vmul.f32 0.1, %v1844_v31  ;;  %v1893_v39 = vmul.f32 0.1, %v1845_v46  ;;  %v2012_v32 = vadd.f32 %v2817_v17, %v1826_v56  ;;  %v2013_v3 = vadd.f32 %v2821_v0, %v1826_v56  ;;  %v2907_v0 = vpop.permute.xlu1 %1781  ;;  %v3041_v23 = vld [vmem:[#allocation14_spill] sm:$0xff] }
 0x36e   :  { %2099 = vst [vmem:[#allocation7 + $0xf8] sm:$0xff] %v2075_v9  ;;  %v1894_v54 = vmul.f32 0.1, %v1846_v18  ;;  %v1895_v10 = vmul.f32 0.1, %v1847_v21  ;;  %v2014_v58 = vadd.f32 %v2825_v16, %v1826_v56  ;;  %v2015_v14 = vadd.f32 %v2829_v34, %v1826_v56 }
 0x36f   :  { %v1896_v15 = vmul.f32 0.1, %v1848_v44  ;;  %v1897_v33 = vmul.f32 0.1, %v1849_v59  ;;  %v1898_v6 = vmul.f32 0.1, %v1850_v62  ;;  %v1916_v11 = vsel %vm1868_vm9, %v1844_v31, %v1892_v61 }
 0x370   :  { %v1899_v57 = vmul.f32 0.1, %v1851_v63  ;;  %v1917_v30 = vsel %vm1869_vm10, %v1845_v46, %v1893_v39  ;;  %v1918_v52 = vsel %vm1870_vm11, %v1846_v18, %v1894_v54  ;;  %v1919_v17 = vsel %vm1871_vm12, %v1847_v21, %v1895_v10  ;;  %1940 = vst [vmem:[#allocation7 + $0x80] sm:$0xff] %v1916_v11  ;;  %v3043_v21 = vld [vmem:[#allocation22_spill] sm:$0xff] }
 0x371   :  { %v1920_v24 = vsel %vm1872_vm13, %v1848_v44, %v1896_v15  ;;  %1941 = vst [vmem:[#allocation7 + $0x88] sm:$0xff] %v1917_v30  ;;  %v2016_v16 = vadd.f32 %v2873_v28, %v1826_v56  ;;  %v1921_v34 = vsel %vm1873_vm14, %v1849_v59, %v1897_v33  ;;  %v2017_v36 = vadd.f32 %v2877_v8, %v1826_v56 }
 0x372   :  { %1942 = vst [vmem:[#allocation7 + $0x90] sm:$0xff] %v1918_v52  ;;  %v2018_v5 = vadd.f32 %v1994_v2, %v1826_v56  ;;  %v2019_v43 = vadd.f32 %v1995_v50, %v1826_v56  ;;  %v1922_v1 = vsel %vm1874_vm15, %v1850_v62, %v1898_v6  ;;  %v1923_v47 = vsel %vm1875_vm0, %v1851_v63, %v1899_v57  ;;  %v3042_v50 = vld [vmem:[#allocation18_spill] sm:$0xff] }
 0x373   :  { %1943 = vst [vmem:[#allocation7 + $0x98] sm:$0xff] %v1919_v17  ;;  %vm2036_vm1 = vcmp.gt.f32.partialorder %v2012_v32, 0.0  ;;  %vm2037_vm2 = vcmp.gt.f32.partialorder %v2013_v3, 0.0  ;;  %vm2038_vm3 = vcmp.gt.f32.partialorder %v2014_v58, 0.0  ;;  %vm2039_vm4 = vcmp.gt.f32.partialorder %v2015_v14, 0.0 }
 0x374   :  { %1944 = vst [vmem:[#allocation7 + $0xa0] sm:$0xff] %v1920_v24  ;;  %vm2040_vm5 = vcmp.gt.f32.partialorder %v2016_v16, 0.0  ;;  %vm2041_vm6 = vcmp.gt.f32.partialorder %v2017_v36, 0.0  ;;  %vm2042_vm7 = vcmp.gt.f32.partialorder %v2018_v5, 0.0  ;;  %v2060_v25 = vmul.f32 0.1, %v2012_v32 }
 0x375   :  { %1945 = vst [vmem:[#allocation7 + $0xa8] sm:$0xff] %v1921_v34  ;;  %v2061_v28 = vmul.f32 0.1, %v2013_v3  ;;  %vm2043_vm8 = vcmp.gt.f32.partialorder %v2019_v43, 0.0  ;;  %v2062_v8 = vmul.f32 0.1, %v2014_v58  ;;  %v1797_v20 = vmul.f32 %v2907_v0, %v3039_v7  ;;  %v1821_v62 = vpop.permute.xlu1 %1820 }
 0x376   :  { %1946 = vst [vmem:[#allocation7 + $0xb0] sm:$0xff] %v1922_v1  ;;  %v2063_v40 = vmul.f32 0.1, %v2015_v14  ;;  %v2064_v2 = vmul.f32 0.1, %v2016_v16  ;;  %v2084_v55 = vsel %vm2036_vm1, %v2012_v32, %v2060_v25  ;;  %v1798_v22 = vmul.f32 %v2907_v0, %v3040_v13 }
 0x377   :  { %1947 = vst [vmem:[#allocation7 + $0xb8] sm:$0xff] %v1923_v47  ;;  %v2065_v41 = vmul.f32 0.1, %v2017_v36  ;;  %v2085_v38 = vsel %vm2037_vm2, %v2013_v3, %v2061_v28  ;;  %v2066_v37 = vmul.f32 0.1, %v2018_v5  ;;  %v2086_v35 = vsel %vm2038_vm3, %v2014_v58, %v2062_v8 }
 0x378   :  { %v2067_v56 = vmul.f32 0.1, %v2019_v43  ;;  %v2087_v29 = vsel %vm2039_vm4, %v2015_v14, %v2063_v40  ;;  %2108 = vst [vmem:[#allocation7 + $0x140] sm:$0xff] %v2084_v55  ;;  %v2088_v26 = vsel %vm2040_vm5, %v2016_v16, %v2064_v2  ;;  %v1799_v9 = vmul.f32 %v2907_v0, %v3041_v23 }
 0x379   :  { %2109 = vst [vmem:[#allocation7 + $0x148] sm:$0xff] %v2085_v38  ;;  %v1800_v31 = vmul.f32 %v2907_v0, %v3042_v50  ;;  %v2089_v46 = vsel %vm2041_vm6, %v2017_v36, %v2065_v41  ;;  %v2090_v18 = vsel %vm2042_vm7, %v2018_v5, %v2066_v37  ;;  %v1801_v44 = vmul.f32 %v2907_v0, %v3043_v21 }
 0x37a   :  { %2110 = vst [vmem:[#allocation7 + $0x150] sm:$0xff] %v2086_v35  ;;  %v1802_v59 = vmul.f32 %v2907_v0, %v2551_v45  ;;  %v2091_v63 = vsel %vm2043_vm8, %v2019_v43, %v2067_v56  ;;  %v1803_v61 = vmul.f32 %v2907_v0, %v2560_v48  ;;  %v1804_v39 = vmul.f32 %v2907_v0, %v2570_v51 }
 0x37b   :  { %2111 = vst [vmem:[#allocation7 + $0x158] sm:$0xff] %v2087_v29  ;;  %v1980_v32 = vmul.f32 %v2907_v0, %v2597_v42  ;;  %v1981_v3 = vmul.f32 %v2907_v0, %v2599_v49  ;;  %v1982_v45 = vmul.f32 %v2907_v0, %v2604_v60  ;;  %v1983_v54 = vmul.f32 %v2907_v0, %v2609_v12 }
 0x37c   :  { %2112 = vst [vmem:[#allocation7 + $0x160] sm:$0xff] %v2088_v26  ;;  %v1984_v10 = vmul.f32 %v2907_v0, %v2614_v4  ;;  %v1836_v48 = vadd.f32 %v1821_v62, %v1797_v20  ;;  %v1837_v58 = vadd.f32 %v1821_v62, %v1798_v22  ;;  %v1838_v51 = vadd.f32 %v1821_v62, %v1799_v9 }
 0x37d   :  { %2113 = vst [vmem:[#allocation7 + $0x168] sm:$0xff] %v2089_v46  ;;  %v1839_v14 = vadd.f32 %v1821_v62, %v1800_v31  ;;  %v1985_v42 = vmul.f32 %v2907_v0, %v2624_v27  ;;  %v1840_v15 = vadd.f32 %v1821_v62, %v1801_v44  ;;  %v1841_v49 = vadd.f32 %v1821_v62, %v1802_v59 }
 0x37e   :  { %2114 = vst [vmem:[#allocation7 + $0x170] sm:$0xff] %v2090_v18  ;;  %v1842_v33 = vadd.f32 %v1821_v62, %v1803_v61  ;;  %v1843_v60 = vadd.f32 %v1821_v62, %v1804_v39  ;;  %vm1860_vm9 = vcmp.gt.f32.partialorder %v1836_v48, 0.0  ;;  %vm1861_vm10 = vcmp.gt.f32.partialorder %v1837_v58, 0.0 }
 0x37f   :  { %2115 = vst [vmem:[#allocation7 + $0x178] sm:$0xff] %v2091_v63  ;;  %vm1862_vm11 = vcmp.gt.f32.partialorder %v1838_v51, 0.0  ;;  %vm1863_vm12 = vcmp.gt.f32.partialorder %v1839_v14, 0.0  ;;  %vm1864_vm13 = vcmp.gt.f32.partialorder %v1840_v15, 0.0  ;;  %vm1865_vm14 = vcmp.gt.f32.partialorder %v1841_v49, 0.0 }
 0x380   :  { %vm1866_vm15 = vcmp.gt.f32.partialorder %v1842_v33, 0.0  ;;  %v1986_v12 = vmul.f32 %v2907_v0, %v2630_v19  ;;  %v1884_v4 = vmul.f32 0.1, %v1836_v48  ;;  %v1885_v6 = vmul.f32 0.1, %v1837_v58 }
 0x381   :  { %v1886_v11 = vmul.f32 0.1, %v1838_v51  ;;  %v1887_v57 = vmul.f32 0.1, %v1839_v14  ;;  %v1888_v27 = vmul.f32 0.1, %v1840_v15  ;;  %v2004_v52 = vadd.f32 %v1980_v32, %v1821_v62 }
 0x382   :  { %v1889_v30 = vmul.f32 0.1, %v1841_v49  ;;  %v1890_v17 = vmul.f32 0.1, %v1842_v33  ;;  %v1891_v24 = vmul.f32 0.1, %v1843_v60  ;;  %v1908_v16 = vsel %vm1860_vm9, %v1836_v48, %v1884_v4 }
 0x383   :  { %v1909_v34 = vsel %vm1861_vm10, %v1837_v58, %v1885_v6  ;;  %vm1867_vm0 = vcmp.gt.f32.partialorder %v1843_v60, 0.0  ;;  %v1910_v36 = vsel %vm1862_vm11, %v1838_v51, %v1886_v11  ;;  %v1911_v5 = vsel %vm1863_vm12, %v1839_v14, %v1887_v57  ;;  %1932 = vst [vmem:[#allocation7 + $0x40] sm:$0xff] %v1908_v16 }
 0x384   :  { %v2005_v19 = vadd.f32 %v1981_v3, %v1821_v62  ;;  %v1987_v43 = vmul.f32 %v2907_v0, %v2640_v53  ;;  %v1912_v1 = vsel %vm1864_vm13, %v1840_v15, %v1888_v27  ;;  %1933 = vst [vmem:[#allocation7 + $0x48] sm:$0xff] %v1909_v34  ;;  %v2006_v47 = vadd.f32 %v1982_v45, %v1821_v62 }
 0x385   :  { %v2007_v25 = vadd.f32 %v1983_v54, %v1821_v62  ;;  %v1913_v28 = vsel %vm1865_vm14, %v1841_v49, %v1889_v30  ;;  %1934 = vst [vmem:[#allocation7 + $0x50] sm:$0xff] %v1910_v36  ;;  %v2008_v8 = vadd.f32 %v1984_v10, %v1821_v62  ;;  %v2009_v40 = vadd.f32 %v1985_v42, %v1821_v62 }
 0x386   :  { %v2010_v7 = vadd.f32 %v1986_v12, %v1821_v62  ;;  %v1914_v20 = vsel %vm1866_vm15, %v1842_v33, %v1890_v17  ;;  %v1915_v2 = vsel %vm1867_vm0, %v1843_v60, %v1891_v24  ;;  %1935 = vst [vmem:[#allocation7 + $0x58] sm:$0xff] %v1911_v5  ;;  %v2011_v41 = vadd.f32 %v1987_v43, %v1821_v62 }
 0x387   :  { %vm2028_vm1 = vcmp.gt.f32.partialorder %v2004_v52, 0.0  ;;  %1936 = vst [vmem:[#allocation7 + $0x60] sm:$0xff] %v1912_v1  ;;  %vm2029_vm2 = vcmp.gt.f32.partialorder %v2005_v19, 0.0  ;;  %vm2030_vm3 = vcmp.gt.f32.partialorder %v2006_v47, 0.0  ;;  %vm2031_vm4 = vcmp.gt.f32.partialorder %v2007_v25, 0.0 }
 0x388   :  { %vm2032_vm5 = vcmp.gt.f32.partialorder %v2008_v8, 0.0  ;;  %1937 = vst [vmem:[#allocation7 + $0x68] sm:$0xff] %v1913_v28  ;;  %vm2033_vm6 = vcmp.gt.f32.partialorder %v2009_v40, 0.0  ;;  %v2052_v53 = vmul.f32 0.1, %v2004_v52  ;;  %vm2034_vm7 = vcmp.gt.f32.partialorder %v2010_v7, 0.0 }
 0x389   :  { %v2053_v0 = vmul.f32 0.1, %v2005_v19  ;;  %1938 = vst [vmem:[#allocation7 + $0x70] sm:$0xff] %v1914_v20  ;;  %v2054_v55 = vmul.f32 0.1, %v2006_v47  ;;  %vm2035_vm8 = vcmp.gt.f32.partialorder %v2011_v41, 0.0 }
 0x38a   :  { %v2055_v38 = vmul.f32 0.1, %v2007_v25  ;;  %1939 = vst [vmem:[#allocation7 + $0x78] sm:$0xff] %v1915_v2  ;;  %v2056_v37 = vmul.f32 0.1, %v2008_v8  ;;  %v2076_v35 = vsel %vm2028_vm1, %v2004_v52, %v2052_v53 }
 0x38b   :  { %v2057_v56 = vmul.f32 0.1, %v2009_v40  ;;  %v2077_v29 = vsel %vm2029_vm2, %v2005_v19, %v2053_v0  ;;  %v2058_v26 = vmul.f32 0.1, %v2010_v7  ;;  %v2059_v13 = vmul.f32 0.1, %v2011_v41 }
 0x38c   :  { %v2078_v22 = vsel %vm2030_vm3, %v2006_v47, %v2054_v55  ;;  %v2079_v23 = vsel %vm2031_vm4, %v2007_v25, %v2055_v38  ;;  %2100 = vst [vmem:[#allocation7 + $0x100] sm:$0xff] %v2076_v35  ;;  %v2080_v9 = vsel %vm2032_vm5, %v2008_v8, %v2056_v37 }
 0x38d   :  { %2101 = vst [vmem:[#allocation7 + $0x108] sm:$0xff] %v2077_v29  ;;  %v2081_v50 = vsel %vm2033_vm6, %v2009_v40, %v2057_v56  ;;  %v2082_v31 = vsel %vm2034_vm7, %v2010_v7, %v2058_v26  ;;  %v2083_v46 = vsel %vm2035_vm8, %v2011_v41, %v2059_v13 }
 0x38e   :  { %2102 = vst [vmem:[#allocation7 + $0x110] sm:$0xff] %v2078_v22 }
 0x38f   :  { %2103 = vst [vmem:[#allocation7 + $0x118] sm:$0xff] %v2079_v23 }
 0x390   :  { %2104 = vst [vmem:[#allocation7 + $0x120] sm:$0xff] %v2080_v9 }
 0x391   :  { %2105 = vst [vmem:[#allocation7 + $0x128] sm:$0xff] %v2081_v50 }
 0x392   :  { %2106 = vst [vmem:[#allocation7 + $0x130] sm:$0xff] %v2082_v31 }
 0x393   :  { %2107 = vst [vmem:[#allocation7 + $0x138] sm:$0xff] %v2083_v46 }
 0x394   :  { %2128 = dma.vmem_to_hbm [thread:$0]  %s2121_s3, 6144, %s2123_s15, [#allocation4], %s2243_s23, %s2243_s23, %s2244_s24  }
 0x395   :  { %2240 = dma.done.wait [#allocation4], 6144  }
 0x396   :  { %2241 = vsyncadd [#allocation4], 4294961152 }
 0x397   :  { %2133 = vsyncpa [#allocation3], 1 }
 0x398   :  { %2134 = vsyncpa [#allocation6], 1 }
 0x399   :  { %2135 = vsyncpa [#allocation4], 1 }

</bundles_post_ra>
